<compile_context>
chip_gen: v7x
topology: tpu7x:2x2x1
jax: 0.10.0
libtpu: 0.0.40
codegen_flags: <defaults>
</compile_context>

<pallas_src>
import functools
from typing import NamedTuple, Tuple, Any

import jax
import jax.numpy as jnp
from jax.experimental import pallas as pl
from jax.experimental.pallas import tpu as pltpu

# Hidden-layer widths as defined by LDAClassifierModel.__init__
HIDDEN_DIMS = [64, 128, 256, 512, 256, 128, 64, 32, 16]
LANE = 128


def _round_up(x, m):
    return (x + m - 1) // m * m


class PackedParams(NamedTuple):
    wblobs: Tuple[Any, ...]      # tuple of bf16 (rows_w, w) blobs, grouped by padded d_out
    bblob: Any                   # f32 (n_layers, max_padded_d_out) biases
    pdims: Tuple[int, ...]       # padded layer widths (input, h1, ..., output)
    layer_plan: Tuple[Tuple[int, int, int, int], ...]  # (blob_idx, row, pdin, pdout)
    out_dim: int                 # true (unpadded) output width


def pack_params(weights, biases):
    """One-time parameter prep: pad to 128 lanes, cast to bf16, group by d_out."""
    n_layers = len(weights)
    dims = [weights[0].shape[0]] + [w.shape[1] for w in weights]
    pdims = tuple(_round_up(d, LANE) for d in dims)

    widths = sorted({pdims[i + 1] for i in range(n_layers)})
    total_rows = {w: 0 for w in widths}
    for i in range(n_layers):
        total_rows[pdims[i + 1]] += pdims[i]

    wblobs = [jnp.zeros((total_rows[w], w), jnp.bfloat16) for w in widths]
    bmax = max(widths)
    bblob = jnp.zeros((n_layers, bmax), jnp.float32)

    row_off = {w: 0 for w in widths}
    layer_plan = []
    for i, (wgt, b) in enumerate(zip(weights, biases)):
        din, dout = wgt.shape
        pdin, pdout = pdims[i], pdims[i + 1]
        bi = widths.index(pdout)
        r = row_off[pdout]
        wblobs[bi] = wblobs[bi].at[r:r + din, :dout].set(wgt.astype(jnp.bfloat16))
        bblob = bblob.at[i, :dout].set(jnp.reshape(b, (-1,)).astype(jnp.float32))
        layer_plan.append((bi, r, pdin, pdout))
        row_off[pdout] = r + pdin

    return PackedParams(tuple(wblobs), bblob, pdims, tuple(layer_plan), dims[-1])


def _mlp_kernel(*refs, layer_plan, n_wblobs):
    """One batch tile through all 10 layers.

    refs = (x_ref, wblob_refs..., b_ref, out_ref)
      x_ref:   (tile_b, pdims[0])           f32
      wblob_i: (rows_i, width_i)            bf16, lane-dense, grouped by width
      b_ref:   (n_layers, max_width)        f32
      out_ref: (tile_b, pdims[-1])          f32
    """
    x_ref = refs[0]
    wrefs = refs[1:1 + n_wblobs]
    b_ref = refs[1 + n_wblobs]
    out_ref = refs[2 + n_wblobs]

    n_layers = len(layer_plan)
    h = x_ref[...]                                     # f32 activations
    for i, (bi, row, pdin, pdout) in enumerate(layer_plan):
        w = wrefs[bi][row:row + pdin, :]               # static 128-aligned slice, bf16
        b = b_ref[i:i + 1, :pdout]                     # f32 bias row
        acc = jnp.dot(h.astype(jnp.bfloat16), w,       # bf16 MXU, f32 accumulate
                      preferred_element_type=jnp.float32)
        h = acc + b                                    # f32 VPU
        if i < n_layers - 1:                           # no ReLU after last layer
            h = jnp.maximum(h, 0.0)
    out_ref[...] = h.astype(out_ref.dtype)


def _choose_tile_b(B, requested):
    """Big batch tiles, but keep >= 2 grid steps so v7x can use both TCs."""
    requested = max(LANE, _round_up(requested, LANE))
    b128 = _round_up(max(B, 1), LANE)
    if b128 >= 2 * LANE:
        return min(requested, (b128 // 2) // LANE * LANE)
    return LANE


def lda_classifier_forward(x, params: PackedParams, *, tile_b=512):
    """LDAClassifierModel forward pass via a Pallas TPU kernel.

    x:      (B, input_size) float32
    params: PackedParams from pack_params() (pre-padded, pre-cast blobs)
    """
    B, in_dim = x.shape
    pdims = params.pdims
    n_wblobs = len(params.wblobs)

    tile = _choose_tile_b(B, tile_b)
    B_pad = _round_up(max(B, 1), tile)
    x_pad = jnp.zeros((B_pad, pdims[0]), jnp.float32)
    x_pad = x_pad.at[:B, :in_dim].set(x.astype(jnp.float32))

    grid = (B_pad // tile,)
    kernel = functools.partial(_mlp_kernel,
                               layer_plan=params.layer_plan,
                               n_wblobs=n_wblobs)

    in_specs = [pl.BlockSpec((tile, pdims[0]), lambda i: (i, 0))]
    for blob in params.wblobs:
        in_specs.append(pl.BlockSpec(blob.shape, lambda i: (0, 0)))   # VMEM-resident
    in_specs.append(pl.BlockSpec(params.bblob.shape, lambda i: (0, 0)))

    out_pad = pl.pallas_call(
        kernel,
        out_shape=jax.ShapeDtypeStruct((B_pad, pdims[-1]), jnp.float32),
        grid_spec=pl.GridSpec(
            grid=grid,
            in_specs=in_specs,
            out_specs=pl.BlockSpec((tile, pdims[-1]), lambda i: (i, 0)),
        ),
        compiler_params=pltpu.CompilerParams(
            dimension_semantics=("parallel",),
            vmem_limit_bytes=32 * 1024 * 1024,
        ),
    )(x_pad, *params.wblobs, params.bblob)

    return out_pad[:B, :params.out_dim]


def init_params(key, input_size, output_size):
    """Deterministic PyTorch-style (uniform +/- 1/sqrt(fan_in)) init."""
    dims = [input_size] + HIDDEN_DIMS + [output_size]
    weights, biases = [], []
    for i in range(len(dims) - 1):
        d_in, d_out = dims[i], dims[i + 1]
        key, kw, kb = jax.random.split(key, 3)
        bound = 1.0 / jnp.sqrt(jnp.float32(d_in))
        w = jax.random.uniform(kw, (d_in, d_out), jnp.float32, -bound, bound)
        b = jax.random.uniform(kb, (d_out,), jnp.float32, -bound, bound)
        weights.append(w)
        biases.append(b)
    return weights, biases


def reference_forward_f32(x, weights, biases):
    h = x
    n = len(weights)
    for i, (w, b) in enumerate(zip(weights, biases)):
        h = h @ w + jnp.reshape(b, (1, -1))
        if i < n - 1:
            h = jnp.maximum(h, 0.0)
    return h


def reference_forward_bf16(x, weights, biases):
    """Exact emulation of the kernel's numerics (bf16 operands, f32 accumulate)."""
    h = x.astype(jnp.float32)
    n = len(weights)
    for i, (w, b) in enumerate(zip(weights, biases)):
        acc = jnp.dot(h.astype(jnp.bfloat16), w.astype(jnp.bfloat16),
                      preferred_element_type=jnp.float32)
        h = acc + jnp.reshape(b, (1, -1)).astype(jnp.float32)
        if i < n - 1:
            h = jnp.maximum(h, 0.0)
    return h


if __name__ == "__main__":
    batch = 200          # not a multiple of 128 -> exercises batch padding and
    input_size = 32      # a 2-step "parallel" batch grid (tile_b clamps to 128)
    output_size = 10

    key = jax.random.PRNGKey(0)
    key, kx = jax.random.split(key)
    x = jax.random.normal(kx, (batch, input_size), dtype=jnp.float32)

    weights, biases = init_params(key, input_size, output_size)

    packed = pack_params(weights, biases)        # one-time, outside the hot path
    out = lda_classifier_forward(x, packed)
    out = jax.block_until_ready(out)

    assert out.shape == (batch, output_size)

    # Tight check against an exact emulation of the kernel's bf16/f32 math.
    ref_bf16 = reference_forward_bf16(x, weights, biases)
    assert jnp.allclose(out, ref_bf16, atol=1e-3, rtol=1e-3), "mismatch vs bf16 reference"

    # Loose sanity check against the full-f32 PyTorch-equivalent reference.
    ref_f32 = reference_forward_f32(x, weights, biases)
    assert jnp.allclose(out, ref_f32, atol=1e-1, rtol=1e-1), "mismatch vs f32 reference"

    print("KERNEL_OK")
</pallas_src>

<mosaic_0001>
module attributes {stable_mosaic.version = 11 : i64} {
  func.func @_mlp_kernel(%arg0: i32, %arg1: memref<128x128xf32, #tpu.memory_space<vmem>>, %arg2: memref<1024x128xbf16, #tpu.memory_space<vmem>>, %arg3: memref<640x256xbf16, #tpu.memory_space<vmem>>, %arg4: memref<256x512xbf16, #tpu.memory_space<vmem>>, %arg5: memref<10x512xf32, #tpu.memory_space<vmem>>, %arg6: memref<128x128xf32, #tpu.memory_space<vmem>>) attributes {dimension_semantics = [#tpu.dimension_semantics<parallel>], iteration_bounds = array<i64: 2>, scalar_prefetch = 0 : i64, scratch_operands = 0 : i64, tpu.core_type = #tpu.core_type<tc>, window_params = [{transform_indices = @transform_0, window_bounds = array<i64: 128, 128>}, {pipeline_mode = #tpu.pipeline_mode<synchronous>, transform_indices = @transform_1, window_bounds = array<i64: 1024, 128>}, {pipeline_mode = #tpu.pipeline_mode<synchronous>, transform_indices = @transform_2, window_bounds = array<i64: 640, 256>}, {pipeline_mode = #tpu.pipeline_mode<synchronous>, transform_indices = @transform_3, window_bounds = array<i64: 256, 512>}, {pipeline_mode = #tpu.pipeline_mode<synchronous>, transform_indices = @transform_4, window_bounds = array<i64: 10, 512>}, {transform_indices = @transform_5, window_bounds = array<i64: 128, 128>}]} {
    %c0 = arith.constant 0 : index
    %c0_0 = arith.constant 0 : index
    %0 = vector.load %arg1[%c0, %c0_0] : memref<128x128xf32, #tpu.memory_space<vmem>>, vector<128x128xf32>
    %c0_1 = arith.constant 0 : index
    %c0_2 = arith.constant 0 : index
    %1 = vector.load %arg2[%c0_1, %c0_2] : memref<1024x128xbf16, #tpu.memory_space<vmem>>, vector<128x128xbf16>
    %c0_3 = arith.constant 0 : index
    %c0_4 = arith.constant 0 : index
    %2 = vector.load %arg5[%c0_3, %c0_4] : memref<10x512xf32, #tpu.memory_space<vmem>>, vector<1x128xf32>
    %3 = arith.truncf %0 : vector<128x128xf32> to vector<128x128xbf16>
    %cst = arith.constant dense<0.000000e+00> : vector<128x128xf32>
    %4 = tpu.matmul %3, %1, %cst {dimension_numbers = #tpu.dot_dimension_numbers<[1], [0], [0], [1], [0, 0, 1, 1], [], []>} : vector<128x128xbf16>, vector<128x128xbf16>, vector<128x128xf32> -> vector<128x128xf32>
    %5 = vector.broadcast %2 : vector<1x128xf32> to vector<128x128xf32>
    %6 = arith.addf %4, %5 : vector<128x128xf32>
    %cst_5 = arith.constant 0.000000e+00 : f32
    %7 = vector.broadcast %cst_5 : f32 to vector<128x128xf32>
    %8 = arith.maximumf %6, %7 : vector<128x128xf32>
    %c128 = arith.constant 128 : index
    %c0_6 = arith.constant 0 : index
    %9 = vector.load %arg2[%c128, %c0_6] : memref<1024x128xbf16, #tpu.memory_space<vmem>>, vector<128x128xbf16>
    %c1 = arith.constant 1 : index
    %c0_7 = arith.constant 0 : index
    %10 = vector.load %arg5[%c1, %c0_7] : memref<10x512xf32, #tpu.memory_space<vmem>>, vector<1x128xf32>
    %11 = arith.truncf %8 : vector<128x128xf32> to vector<128x128xbf16>
    %cst_8 = arith.constant dense<0.000000e+00> : vector<128x128xf32>
    %12 = tpu.matmul %11, %9, %cst_8 {dimension_numbers = #tpu.dot_dimension_numbers<[1], [0], [0], [1], [0, 0, 1, 1], [], []>} : vector<128x128xbf16>, vector<128x128xbf16>, vector<128x128xf32> -> vector<128x128xf32>
    %13 = vector.broadcast %10 : vector<1x128xf32> to vector<128x128xf32>
    %14 = arith.addf %12, %13 : vector<128x128xf32>
    %cst_9 = arith.constant 0.000000e+00 : f32
    %15 = vector.broadcast %cst_9 : f32 to vector<128x128xf32>
    %16 = arith.maximumf %14, %15 : vector<128x128xf32>
    %c0_10 = arith.constant 0 : index
    %c0_11 = arith.constant 0 : index
    %17 = vector.load %arg3[%c0_10, %c0_11] : memref<640x256xbf16, #tpu.memory_space<vmem>>, vector<128x256xbf16>
    %c2 = arith.constant 2 : index
    %c0_12 = arith.constant 0 : index
    %18 = vector.load %arg5[%c2, %c0_12] : memref<10x512xf32, #tpu.memory_space<vmem>>, vector<1x256xf32>
    %19 = arith.truncf %16 : vector<128x128xf32> to vector<128x128xbf16>
    %cst_13 = arith.constant dense<0.000000e+00> : vector<128x256xf32>
    %20 = tpu.matmul %19, %17, %cst_13 {dimension_numbers = #tpu.dot_dimension_numbers<[1], [0], [0], [1], [0, 0, 1, 1], [], []>} : vector<128x128xbf16>, vector<128x256xbf16>, vector<128x256xf32> -> vector<128x256xf32>
    %21 = vector.broadcast %18 : vector<1x256xf32> to vector<128x256xf32>
    %22 = arith.addf %20, %21 : vector<128x256xf32>
    %cst_14 = arith.constant 0.000000e+00 : f32
    %23 = vector.broadcast %cst_14 : f32 to vector<128x256xf32>
    %24 = arith.maximumf %22, %23 : vector<128x256xf32>
    %c0_15 = arith.constant 0 : index
    %c0_16 = arith.constant 0 : index
    %25 = vector.load %arg4[%c0_15, %c0_16] : memref<256x512xbf16, #tpu.memory_space<vmem>>, vector<256x512xbf16>
    %c3 = arith.constant 3 : index
    %c0_17 = arith.constant 0 : index
    %26 = vector.load %arg5[%c3, %c0_17] : memref<10x512xf32, #tpu.memory_space<vmem>>, vector<1x512xf32>
    %27 = arith.truncf %24 : vector<128x256xf32> to vector<128x256xbf16>
    %cst_18 = arith.constant dense<0.000000e+00> : vector<128x512xf32>
    %28 = tpu.matmul %27, %25, %cst_18 {dimension_numbers = #tpu.dot_dimension_numbers<[1], [0], [0], [1], [0, 0, 1, 1], [], []>} : vector<128x256xbf16>, vector<256x512xbf16>, vector<128x512xf32> -> vector<128x512xf32>
    %29 = vector.broadcast %26 : vector<1x512xf32> to vector<128x512xf32>
    %30 = arith.addf %28, %29 : vector<128x512xf32>
    %cst_19 = arith.constant 0.000000e+00 : f32
    %31 = vector.broadcast %cst_19 : f32 to vector<128x512xf32>
    %32 = arith.maximumf %30, %31 : vector<128x512xf32>
    %c128_20 = arith.constant 128 : index
    %c0_21 = arith.constant 0 : index
    %33 = vector.load %arg3[%c128_20, %c0_21] : memref<640x256xbf16, #tpu.memory_space<vmem>>, vector<512x256xbf16>
    %c4 = arith.constant 4 : index
    %c0_22 = arith.constant 0 : index
    %34 = vector.load %arg5[%c4, %c0_22] : memref<10x512xf32, #tpu.memory_space<vmem>>, vector<1x256xf32>
    %35 = arith.truncf %32 : vector<128x512xf32> to vector<128x512xbf16>
    %cst_23 = arith.constant dense<0.000000e+00> : vector<128x256xf32>
    %36 = tpu.matmul %35, %33, %cst_23 {dimension_numbers = #tpu.dot_dimension_numbers<[1], [0], [0], [1], [0, 0, 1, 1], [], []>} : vector<128x512xbf16>, vector<512x256xbf16>, vector<128x256xf32> -> vector<128x256xf32>
    %37 = vector.broadcast %34 : vector<1x256xf32> to vector<128x256xf32>
    %38 = arith.addf %36, %37 : vector<128x256xf32>
    %cst_24 = arith.constant 0.000000e+00 : f32
    %39 = vector.broadcast %cst_24 : f32 to vector<128x256xf32>
    %40 = arith.maximumf %38, %39 : vector<128x256xf32>
    %c256 = arith.constant 256 : index
    %c0_25 = arith.constant 0 : index
    %41 = vector.load %arg2[%c256, %c0_25] : memref<1024x128xbf16, #tpu.memory_space<vmem>>, vector<256x128xbf16>
    %c5 = arith.constant 5 : index
    %c0_26 = arith.constant 0 : index
    %42 = vector.load %arg5[%c5, %c0_26] : memref<10x512xf32, #tpu.memory_space<vmem>>, vector<1x128xf32>
    %43 = arith.truncf %40 : vector<128x256xf32> to vector<128x256xbf16>
    %cst_27 = arith.constant dense<0.000000e+00> : vector<128x128xf32>
    %44 = tpu.matmul %43, %41, %cst_27 {dimension_numbers = #tpu.dot_dimension_numbers<[1], [0], [0], [1], [0, 0, 1, 1], [], []>} : vector<128x256xbf16>, vector<256x128xbf16>, vector<128x128xf32> -> vector<128x128xf32>
    %45 = vector.broadcast %42 : vector<1x128xf32> to vector<128x128xf32>
    %46 = arith.addf %44, %45 : vector<128x128xf32>
    %cst_28 = arith.constant 0.000000e+00 : f32
    %47 = vector.broadcast %cst_28 : f32 to vector<128x128xf32>
    %48 = arith.maximumf %46, %47 : vector<128x128xf32>
    %c512 = arith.constant 512 : index
    %c0_29 = arith.constant 0 : index
    %49 = vector.load %arg2[%c512, %c0_29] : memref<1024x128xbf16, #tpu.memory_space<vmem>>, vector<128x128xbf16>
    %c6 = arith.constant 6 : index
    %c0_30 = arith.constant 0 : index
    %50 = vector.load %arg5[%c6, %c0_30] : memref<10x512xf32, #tpu.memory_space<vmem>>, vector<1x128xf32>
    %51 = arith.truncf %48 : vector<128x128xf32> to vector<128x128xbf16>
    %cst_31 = arith.constant dense<0.000000e+00> : vector<128x128xf32>
    %52 = tpu.matmul %51, %49, %cst_31 {dimension_numbers = #tpu.dot_dimension_numbers<[1], [0], [0], [1], [0, 0, 1, 1], [], []>} : vector<128x128xbf16>, vector<128x128xbf16>, vector<128x128xf32> -> vector<128x128xf32>
    %53 = vector.broadcast %50 : vector<1x128xf32> to vector<128x128xf32>
    %54 = arith.addf %52, %53 : vector<128x128xf32>
    %cst_32 = arith.constant 0.000000e+00 : f32
    %55 = vector.broadcast %cst_32 : f32 to vector<128x128xf32>
    %56 = arith.maximumf %54, %55 : vector<128x128xf32>
    %c640 = arith.constant 640 : index
    %c0_33 = arith.constant 0 : index
    %57 = vector.load %arg2[%c640, %c0_33] : memref<1024x128xbf16, #tpu.memory_space<vmem>>, vector<128x128xbf16>
    %c7 = arith.constant 7 : index
    %c0_34 = arith.constant 0 : index
    %58 = vector.load %arg5[%c7, %c0_34] : memref<10x512xf32, #tpu.memory_space<vmem>>, vector<1x128xf32>
    %59 = arith.truncf %56 : vector<128x128xf32> to vector<128x128xbf16>
    %cst_35 = arith.constant dense<0.000000e+00> : vector<128x128xf32>
    %60 = tpu.matmul %59, %57, %cst_35 {dimension_numbers = #tpu.dot_dimension_numbers<[1], [0], [0], [1], [0, 0, 1, 1], [], []>} : vector<128x128xbf16>, vector<128x128xbf16>, vector<128x128xf32> -> vector<128x128xf32>
    %61 = vector.broadcast %58 : vector<1x128xf32> to vector<128x128xf32>
    %62 = arith.addf %60, %61 : vector<128x128xf32>
    %cst_36 = arith.constant 0.000000e+00 : f32
    %63 = vector.broadcast %cst_36 : f32 to vector<128x128xf32>
    %64 = arith.maximumf %62, %63 : vector<128x128xf32>
    %c768 = arith.constant 768 : index
    %c0_37 = arith.constant 0 : index
    %65 = vector.load %arg2[%c768, %c0_37] : memref<1024x128xbf16, #tpu.memory_space<vmem>>, vector<128x128xbf16>
    %c8 = arith.constant 8 : index
    %c0_38 = arith.constant 0 : index
    %66 = vector.load %arg5[%c8, %c0_38] : memref<10x512xf32, #tpu.memory_space<vmem>>, vector<1x128xf32>
    %67 = arith.truncf %64 : vector<128x128xf32> to vector<128x128xbf16>
    %cst_39 = arith.constant dense<0.000000e+00> : vector<128x128xf32>
    %68 = tpu.matmul %67, %65, %cst_39 {dimension_numbers = #tpu.dot_dimension_numbers<[1], [0], [0], [1], [0, 0, 1, 1], [], []>} : vector<128x128xbf16>, vector<128x128xbf16>, vector<128x128xf32> -> vector<128x128xf32>
    %69 = vector.broadcast %66 : vector<1x128xf32> to vector<128x128xf32>
    %70 = arith.addf %68, %69 : vector<128x128xf32>
    %cst_40 = arith.constant 0.000000e+00 : f32
    %71 = vector.broadcast %cst_40 : f32 to vector<128x128xf32>
    %72 = arith.maximumf %70, %71 : vector<128x128xf32>
    %c896 = arith.constant 896 : index
    %c0_41 = arith.constant 0 : index
    %73 = vector.load %arg2[%c896, %c0_41] : memref<1024x128xbf16, #tpu.memory_space<vmem>>, vector<128x128xbf16>
    %c9 = arith.constant 9 : index
    %c0_42 = arith.constant 0 : index
    %74 = vector.load %arg5[%c9, %c0_42] : memref<10x512xf32, #tpu.memory_space<vmem>>, vector<1x128xf32>
    %75 = arith.truncf %72 : vector<128x128xf32> to vector<128x128xbf16>
    %cst_43 = arith.constant dense<0.000000e+00> : vector<128x128xf32>
    %76 = tpu.matmul %75, %73, %cst_43 {dimension_numbers = #tpu.dot_dimension_numbers<[1], [0], [0], [1], [0, 0, 1, 1], [], []>} : vector<128x128xbf16>, vector<128x128xbf16>, vector<128x128xf32> -> vector<128x128xf32>
    %77 = vector.broadcast %74 : vector<1x128xf32> to vector<128x128xf32>
    %78 = arith.addf %76, %77 : vector<128x128xf32>
    %c0_44 = arith.constant 0 : index
    %c0_45 = arith.constant 0 : index
    %79 = vector.load %arg6[%c0_44, %c0_45] : memref<128x128xf32, #tpu.memory_space<vmem>>, vector<128x128xf32>
    tpu.vector_store %arg6[%c0_44, %c0_45], %78 {strides = array<i32>} : memref<128x128xf32, #tpu.memory_space<vmem>>, vector<128x128xf32>,
    return
  }
  func.func @transform_0(%arg0: i32) -> (i32, i32) {
    %c0_i32 = arith.constant 0 : i32
    %c0_i32_0 = arith.constant 0 : i32
    return %arg0, %c0_i32 : i32, i32
  }
  func.func @transform_1(%arg0: i32) -> (i32, i32) {
    %c0_i32 = arith.constant 0 : i32
    %c0_i32_0 = arith.constant 0 : i32
    %c0_i32_1 = arith.constant 0 : i32
    return %c0_i32, %c0_i32_0 : i32, i32
  }
  func.func @transform_2(%arg0: i32) -> (i32, i32) {
    %c0_i32 = arith.constant 0 : i32
    %c0_i32_0 = arith.constant 0 : i32
    %c0_i32_1 = arith.constant 0 : i32
    return %c0_i32, %c0_i32_0 : i32, i32
  }
  func.func @transform_3(%arg0: i32) -> (i32, i32) {
    %c0_i32 = arith.constant 0 : i32
    %c0_i32_0 = arith.constant 0 : i32
    %c0_i32_1 = arith.constant 0 : i32
    return %c0_i32, %c0_i32_0 : i32, i32
  }
  func.func @transform_4(%arg0: i32) -> (i32, i32) {
    %c0_i32 = arith.constant 0 : i32
    %c0_i32_0 = arith.constant 0 : i32
    %c0_i32_1 = arith.constant 0 : i32
    return %c0_i32, %c0_i32_0 : i32, i32
  }
  func.func @transform_5(%arg0: i32) -> (i32, i32) {
    %c0_i32 = arith.constant 0 : i32
    %c0_i32_0 = arith.constant 0 : i32
    return %arg0, %c0_i32 : i32, i32
  }
}

</mosaic_0001>

<bundles_post_ra>
// kernel: tpu_custom_call.1
= control target key start
LH: loop header
LB: loop body
LE: loop exit
PB: predicated region body
PF: predicated region fallthrough
CT: control target
= control target key end

     0   :  { %10 = vsyncpa [#allocation3], 0  ;;  %s5370_s0 = inlined_call_operand.hbm [shape: f32[256,128], index: 0, kind: input, shape index: {}]   ;;  %s5371_s1 = inlined_call_operand.hbm [shape: bf16[1024,128], index: 1, kind: input, shape index: {}]   ;;  %s5372_s2 = inlined_call_operand.hbm [shape: bf16[640,256], index: 2, kind: input, shape index: {}]   ;;  %s5373_s3 = inlined_call_operand.hbm [shape: bf16[256,512], index: 3, kind: input, shape index: {}]   ;;  %s5374_s4 = inlined_call_operand.hbm [shape: f32[10,512], index: 4, kind: input, shape index: {}]   ;;  %s5375_s5 = inlined_call_operand.hbm [shape: f32[256,128], index: 5, kind: output, shape index: {}]  }
   0x1   :  { %12 = vsyncpa [#allocation3 + $0x1], 0 }
   0x2   :  { %13 = vsyncpa [#allocation6], 0 }
   0x3   :  { %14 = vsyncpa [#allocation9], 0 }
   0x4   :  { %15 = vsyncpa [#allocation4], 0 }
   0x5   :  { %17 = vsyncpa [#allocation4 + $0x1], 0  ;;  %s4788_s18 = smov 0   ;;  %s4790_s19 = smov 0  }
   0x6   :  { %s4792_s20 = smov 0   ;;  %s4794_s21 = smov 0  }
   0x7 LB: > { %s4809_s22 = sadd.s32 4294967295, %s4739_s21   ;;  %s3481_s23 = sadd.s32 4294967294, %s4739_s21   ;;  %s4739_s21 = sphi %s4794_s21, %s5398_s21   ;;  %s4735_s20 = sphi %s4792_s20, %s5397_s20   ;;  %s4731_s19 = sphi %s4790_s19, %s5396_s19   ;;  %s4727_s18 = sphi %s4788_s18, %s5395_s18  }
   0x8   : > { %p43_p0 = scmp.ne.s32.totalorder %s4731_s19, %s4727_s18  ;;  %p5376_p1 = scmp.eq.s32.totalorder %s4809_s22, 0 }
   0x9   : > { %p157_p3 = scmp.eq.s32.totalorder %s3481_s23, 1  ;;  %p3482_p5 = scmp.ge.s32.totalorder %s4739_s21, 1 }
   0xa   : > { %p4818_p4 = por %p5376_p1, %p43_p0  ;;  %p164_p7 = scmp.lt.s32.totalorder %s4739_s21, 3 }
   0xb   : > { %p4823_p6 = por %p157_p3, %p43_p0  ;;  %s4741_s27 = smov [#allocation5]  }
   0xc   : > { %s5379_s24 = scalar_select %p4818_p4, 1, 0 }
   0xd   : > { %s5380_s25 = scalar_select %p4823_p6, 1, 0 }
   0xe   : > { %p4828_p8 = pnand %p3482_p5, %p164_p7  ;;  %s176_s28 = sshll.u32 %s4741_s27, 4  ;;  %s4832_s28 = int_to_ptr.vmem [resolvable:$true] %s176_s28 }
   0xf   : > { %s4742_s30 = smov [#allocation8]   ;;  %s4523_s9 = scalar_lea.hbm %s5371_s1, 8192 }
  0x10   : > { %s5381_s26 = scalar_select %p4828_p8, 1, 0 }
  0x11   : > { %p4165_p9 = pneg %p4828_p8  ;;  %s202_s6 = sshll.u32 %s4742_s30, 4  ;;  %s4843_s6 = int_to_ptr.vmem [resolvable:$true] %s202_s6 }
  0x12   : > { %p4524_p12 = scmp.ne.s32.totalorder %s5371_s1, %s4523_s9  ;;  %p4530_p5 = scmp.lt.u32.totalorder %s4523_s9, %s5371_s1 }
  0x13   : > { %p4839_p11 = pnand %p4165_p9, %p5376_p1 }
  0x15   : > { %p4853_p13 = pneg %p4839_p11 }
  0x17   : > { %p4526_p0 = pnand %p4853_p13, %p4524_p12 }
  0x19   : > { %p4527_p3 = pneg %p4526_p0 }
  0x1b   : > { %p4532_p7 = pnand %p4530_p5, %p4527_p3 }
  0x1d   : > { %4535 = shalt.err (!%p4532_p7)
}
  0x1e   : > { %s4536_s15 = scalar_lea.vmem %s4832_s28, 8192  ;;  %p4544_p2 = scmp.lt.s32.totalorder %s4832_s28, %s4832_s28 }
  0x1f   : > { %p4537_p9 = scmp.ne.s32.totalorder %s4832_s28, %s4536_s15  ;;  %p4545_p6 = scmp.lt.s32.totalorder %s4536_s15, %s4536_s15 }
  0x21   : > { %p4539_p10 = pnand %p4537_p9, %p4853_p13  ;;  %p4546_p12 = por %p4545_p6, %p4544_p2 }
  0x23   : > { %p4540_p1 = pneg %p4539_p10 }
  0x25   : > { %p4547_p0 = pnand %p4546_p12, %p4540_p1 }
  0x27   : > { %4550 = shalt.err (!%p4547_p0)
}
  0x28   : > { %s4743_s16 = smov 64   ;;  %s4744_s17 = smov 4  }
  0x29   : > { %4168 = dma.hbm_to_vmem [thread:$0]  (!%p4839_p11), %s5371_s1, 8192, %s4832_s28, [#allocation6], %s4743_s16, %s4743_s16, %s4744_s17  }
  0x2a   : > { %s4551_s8 = scalar_lea.hbm %s5373_s3, 8192 }
  0x2b   : > { %p4552_p2 = scmp.ne.s32.totalorder %s5373_s3, %s4551_s8  ;;  %p4558_p10 = scmp.lt.u32.totalorder %s4551_s8, %s5373_s3 }
  0x2d   : > { %p4554_p1 = pnand %p4552_p2, %p4853_p13 }
  0x2f   : > { %p4555_p6 = pneg %p4554_p1 }
  0x31   : > { %p4560_p3 = pnand %p4558_p10, %p4555_p6 }
  0x33   : > { %4563 = shalt.err (!%p4560_p3)
}
  0x34   : > { %s4564_s28 = scalar_lea.vmem %s4843_s6, 8192  ;;  %p4572_p12 = scmp.lt.s32.totalorder %s4843_s6, %s4843_s6 }
  0x35   : > { %p4565_p5 = scmp.ne.s32.totalorder %s4843_s6, %s4564_s28  ;;  %p4573_p0 = scmp.lt.s32.totalorder %s4564_s28, %s4564_s28 }
  0x37   : > { %p4567_p7 = pnand %p4565_p5, %p4853_p13  ;;  %p4574_p2 = por %p4573_p0, %p4572_p12 }
  0x39   : > { %p4568_p9 = pneg %p4567_p7 }
  0x3b   : > { %p4575_p1 = pnand %p4574_p2, %p4568_p9 }
  0x3d   : > { %4578 = shalt.err (!%p4575_p1)
}
  0x3e   : > { %s4745_s14 = smov 256   ;;  %s4746_s15 = smov 16  }
  0x3f   : > { %4174 = dma.hbm_to_vmem [thread:$0]  (!%p4839_p11), %s5373_s3, 8192, %s4843_s6, [#allocation9], %s4745_s14, %s4745_s14, %s4746_s15  }
  0x40   : > { %s4747_s23 = smov [#allocation7]   ;;  %s4579_s8 = scalar_lea.hbm %s5372_s2, 10240 }
  0x41   : > { %s189_s27 = sshll.u32 %s4747_s23, 4  ;;  %p4580_p6 = scmp.ne.s32.totalorder %s5372_s2, %s4579_s8  ;;  %s190_s27 = int_to_ptr.vmem [resolvable:$true] %s189_s27 }
  0x42   : > { %p4586_p5 = scmp.lt.u32.totalorder %s4579_s8, %s5372_s2 }
  0x43   : > { %p4582_p10 = pnand %p4580_p6, %p4853_p13 }
  0x45   : > { %p4583_p3 = pneg %p4582_p10 }
  0x47   : > { %p4588_p7 = pnand %p4586_p5, %p4583_p3 }
  0x49   : > { %4591 = shalt.err (!%p4588_p7)
}
  0x4a   : > { %s4592_s6 = scalar_lea.vmem %s190_s27, 10240  ;;  %p4600_p2 = scmp.lt.s32.totalorder %s190_s27, %s190_s27 }
  0x4b   : > { %p4593_p9 = scmp.ne.s32.totalorder %s190_s27, %s4592_s6  ;;  %p4601_p1 = scmp.lt.s32.totalorder %s4592_s6, %s4592_s6 }
  0x4d   : > { %p4595_p12 = pnand %p4593_p9, %p4853_p13  ;;  %p4602_p4 = por %p4601_p1, %p4600_p2 }
  0x4f   : > { %p4596_p0 = pneg %p4595_p12 }
  0x51   : > { %p4603_p8 = pnand %p4602_p4, %p4596_p0 }
  0x53   : > { %4606 = shalt.err (!%p4603_p8)
}
  0x54   : > { %s4748_s28 = smov 128   ;;  %s4749_s14 = smov 8  }
  0x55   : > { %4171 = dma.hbm_to_vmem [thread:$0]  (!%p4839_p11), %s5372_s2, 10240, %s190_s27, [#allocation6], %s4748_s28, %s4748_s28, %s4749_s14  }
  0x56   : > { %s4750_s17 = smov [#allocation10]   ;;  %s4607_s8 = scalar_lea.hbm %s5374_s4, 1024 }
  0x57   : > { %s215_s23 = sshll.u32 %s4750_s17, 4  ;;  %p4608_p4 = scmp.ne.s32.totalorder %s5374_s4, %s4607_s8  ;;  %s216_s23 = int_to_ptr.vmem [resolvable:$true] %s215_s23 }
  0x58   : > { %p4614_p10 = scmp.lt.u32.totalorder %s4607_s8, %s5374_s4 }
  0x59   : > { %p4610_p8 = pnand %p4608_p4, %p4853_p13 }
  0x5b   : > { %p4611_p6 = pneg %p4610_p8 }
  0x5d   : > { %p4616_p3 = pnand %p4614_p10, %p4611_p6 }
  0x5f   : > { %4619 = shalt.err (!%p4616_p3)
}
  0x60   : > { %s4620_s27 = scalar_lea.vmem %s216_s23, 1024  ;;  %p4628_p12 = scmp.lt.s32.totalorder %s216_s23, %s216_s23 }
  0x61   : > { %p4621_p5 = scmp.ne.s32.totalorder %s216_s23, %s4620_s27  ;;  %p4629_p0 = scmp.lt.s32.totalorder %s4620_s27, %s4620_s27 }
  0x63   : > { %p4623_p7 = pnand %p4621_p5, %p4853_p13  ;;  %p4630_p2 = por %p4629_p0, %p4628_p12 }
  0x65   : > { %p4624_p9 = pneg %p4623_p7 }
  0x67   : > { %p4631_p1 = pnand %p4630_p2, %p4624_p9 }
  0x69   : > { %4634 = shalt.err (!%p4631_p1)
}
  0x6a   : > { %s4751_s6 = smov 512   ;;  %s4752_s12 = smov 32  }
  0x6b   : > { %4177 = dma.hbm_to_vmem [thread:$0]  (!%p4839_p11), %s5374_s4, 1024, %s216_s23, [#allocation9], %s4751_s6, %s4751_s6, %s4752_s12  }
  0x6c   : > { %s4937_s17 = sadd.s32 1, %s4739_s21   ;;  %s30_s7 = sadd.s32 1, %s4735_s20 }
  0x6d   : > { %s27_s30 = ssub.s32 %s4739_s21, %s4937_s17  ;;  %p37_p4 = scmp.ne.s32.totalorder %s4735_s20, %s4731_s19 }
  0x6e   : > { %p28_p13 = scmp.eq.s32.totalorder %s27_s30, 0  ;;  %p38_p8 = scmp.eq.s32.totalorder %s4739_s21, 0 }
  0x6f   : > { %p5384_p10 = scmp.eq.s32.totalorder %s4809_s22, 1  ;;  %p4190_p5 = scmp.lt.s32.totalorder %s4739_s21, 2 }
  0x70   : > { %s4946_s8 = scalar_select %p28_p13, %s4735_s20, %s30_s7  }
  0x71   : > { %p39_p6 = por %p38_p8, %p37_p4  ;;  %p4950_p3 = por %p5384_p10, %p37_p4 }
  0x72   : > { %s229_s29 = sand.u32 1, %s4735_s20   ;;  %s3711_s23 = sshll.u32 %s4739_s21, 11 }
  0x73   : > { %s3488_s10 = sshll.u32 %s229_s29, 7  ;;  %s4960_s27 = scalar_lea.hbm %s5370_s0, %s3711_s23 }
  0x74   : > { %s233_s6 = scalar_lea.vmem [#allocation2], %s3488_s10  ;;  %p4964_p11 = pnand %p4190_p5, %p39_p6 }
  0x75   : > { %s240_s12 = sshll.u32 %s233_s6, 4  ;;  %s4968_s16 = scalar_lea.sflag [#allocation3], %s229_s29  ;;  %s4962_s12 = int_to_ptr.vmem [resolvable:$true] %s240_s12 }
  0x76   : > { %s4635_s30 = scalar_lea.hbm %s4960_s27, 2048  ;;  %p4637_p9 = pneg %p4964_p11 }
  0x77   : > { %p4636_p7 = scmp.ne.s32.totalorder %s4960_s27, %s4635_s30  ;;  %s4640_s23 = scalar_lea.hbm %s5370_s0, 4096 }
  0x78   : > { %p4641_p2 = scmp.lt.u32.totalorder %s4960_s27, %s5370_s0  ;;  %p4642_p1 = scmp.lt.u32.totalorder %s4640_s23, %s4635_s30 }
  0x79   : > { %p4638_p12 = pnand %p4637_p9, %p4636_p7  ;;  %p4644_p4 = scmp.lt.u32.totalorder %s4635_s30, %s4960_s27 }
  0x7a   : > { %p4643_p13 = por %p4642_p1, %p4641_p2 }
  0x7b   : > { %p4639_p0 = pneg %p4638_p12 }
  0x7c   : > { %p4645_p8 = por %p4644_p4, %p4643_p13 }
  0x7e   : > { %p4646_p6 = pnand %p4645_p8, %p4639_p0 }
  0x80   : > { %4649 = shalt.err (!%p4646_p6)
}
  0x81   : > { %s4650_s29 = scalar_lea.vmem %s4962_s12, 2048  ;;  %s4753_s6 = smov [#allocation2]  }
  0x82   : > { %p4651_p10 = scmp.ne.s32.totalorder %s4962_s12, %s4650_s29  ;;  %s4655_s7 = sshll.u32 %s4753_s6, 4  ;;  %s4656_s7 = int_to_ptr.vmem [resolvable:$false] %s4655_s7 }
  0x83   : > { %s4657_s10 = scalar_lea.vmem %s4656_s7, 4096  ;;  %p4658_p12 = scmp.lt.s32.totalorder %s4962_s12, %s4656_s7 }
  0x84   : > { %p4653_p5 = pnand %p4651_p10, %p4637_p9  ;;  %p4659_p2 = scmp.lt.s32.totalorder %s4657_s10, %s4650_s29 }
  0x86   : > { %p4654_p7 = pneg %p4653_p5  ;;  %p4660_p1 = por %p4659_p2, %p4658_p12 }
  0x88   : > { %p4661_p13 = pnand %p4660_p1, %p4654_p7 }
  0x8a   : > { %4664 = shalt.err (!%p4661_p13)
}
  0x8b   : > { %4181 = dma.hbm_to_vmem [thread:$0]  (!%p4964_p11), %s4960_s27, 2048, %s4962_s12, %s4968_s16, %s4748_s28, %s4748_s28, %s4749_s14  }
  0x8c   : > { %p5387_p9 = scmp.ne.s32.totalorder %s5381_s26, 0 }
  0x8d   : > { %s5002_s30 = sand.u32 (!%p5387_p9), 1, %s4731_s19   ;;  %p5388_p0 = scmp.ne.s32.totalorder (!%p5387_p9), %s5379_s24, 0 }
  0x8e   : > { %252 = sbr.rel (%p5387_p9) target bundleno = 2540 (0x9ec), region = 40  ;;  %s3492_s23 = sshll.u32 (!%p5387_p9), %s5002_s30, 7 }
  0x8f   : > { %s255_s11 = scalar_lea.sflag (!%p5387_p9), [#allocation3], %s5002_s30  ;;  %s5008_s15 = scalar_lea.vmem (!%p5387_p9), [#allocation2], %s3492_s23 }
  0x95   : > { %4710 = dma.done.wait (%p5388_p0), %s255_s11, 2048  }
  0x96   : > { %4712 = vsyncadd (%p5388_p0), %s255_s11, 4294965248  ;;  %p5389_p11 = scmp.eq.s32.totalorder %s4809_s22, 0 }
  0x98   : > { %4714 = dma.done.wait (%p5389_p11), [#allocation6], 18432   ;;  %p5390_p4 = pmov %p5389_p11 }
  0x9a   : > { %4716 = vsyncadd (%p5390_p4), [#allocation6], 4294948864  ;;  %p5391_p8 = pmov %p5390_p4 }
  0x9b   : > { %p5392_p6 = pmov %p5390_p4 }
  0x9c   : > { %4718 = dma.done.wait (%p5391_p8), [#allocation9], 9216  }
  0x9d   : > { %4720 = vsyncadd (%p5392_p6), [#allocation9], 4294958080  ;;  %v4243_v0 = vld [vmem:[#allocation5] sm:$0xff]   ;;  %v4244_v1 = vld [vmem:[#allocation5 + $0x8] sm:$0xff]   ;;  %s5301_s24 = scalar_lea.vmem [#allocation11], %s3492_s23  ;;  %s3712_s26 = sshll.u32 %s4809_s22, 11 }
  0x9e   : > { %3873 = vmatprep.subr.bf16.mxu0 %v4243_v0  ;;  %v4245_v2 = vld [vmem:[#allocation5 + $0x10] sm:$0xff]   ;;  %v4246_v3 = vld [vmem:[#allocation5 + $0x18] sm:$0xff]   ;;  %v304_v4 = vld [vmem:[%s5008_s15] sm:$0xff]  ;;  %s3370_s28 = sshll.u32 %s5301_s24, 4  ;;  %s5321_s12 = scalar_lea.hbm %s5375_s5, %s3712_s26  ;;  %s5323_s28 = int_to_ptr.vmem [resolvable:$true] %s3370_s28 }
  0x9f   : > { %3874 = vmatpush3.bf16.msra.mxu0 %v4243_v0  ;;  %v305_v5 = vld [vmem:[%s5008_s15 + $0x8] sm:$0xff]  ;;  %v4247_v7 = vld [vmem:[#allocation5 + $0x20] sm:$0xff]   ;;  %v4253_v11 = vld [vmem:[#allocation5 + $0x50] sm:$0xff]   ;;  %s3357_s22 = scalar_lea.sflag [#allocation4], %s5002_s30  ;;  %s4665_s16 = scalar_lea.vmem %s5323_s28, 2048 }
  0xa0   : > { %3875 = vmatprep.subr.bf16.mxu0 %v4244_v1  ;;  %v337_v6 = vpack.c.bf16 %v305_v5, %v304_v4  ;;  %v4251_v8 = vld [vmem:[#allocation5 + $0x40] sm:$0xff]   ;;  %v4252_v9 = vld [vmem:[#allocation5 + $0x48] sm:$0xff]   ;;  %v4249_v12 = vld [vmem:[#allocation5 + $0x30] sm:$0xff]   ;;  %p4666_p10 = scmp.ne.s32.totalorder %s5323_s28, %s4665_s16  ;;  %s4755_s13 = smov [#allocation11]  }
  0xa1   : > { %v4248_v10 = vld [vmem:[#allocation5 + $0x28] sm:$0xff]   ;;  %3905 = vmatprep.subr.bf16.mxu1 %v4251_v8  ;;  %v4254_v13 = vld [vmem:[#allocation5 + $0x58] sm:$0xff]   ;;  %v4255_v15 = vld [vmem:[#allocation5 + $0x60] sm:$0xff]   ;;  %s4669_s29 = sshll.u32 %s4755_s13, 4  ;;  %s4670_s29 = int_to_ptr.vmem [resolvable:$false] %s4669_s29 }
  0xa2   : > { %3889 = vmatprep.mubr.bf16.mxu0 %v337_v6  ;;  %3906 = vmatpush3.bf16.msra.mxu1 %v4251_v8  ;;  %v4250_v14 = vld [vmem:[#allocation5 + $0x38] sm:$0xff]   ;;  %v306_v16 = vld [vmem:[%s5008_s15 + $0x10] sm:$0xff]  ;;  %v308_v18 = vld [vmem:[%s5008_s15 + $0x20] sm:$0xff]  ;;  %p4667_p5 = pnand %p4666_p10, %p4950_p3  ;;  %s4671_s6 = scalar_lea.vmem %s4670_s29, 4096 }
  0xa3   : > { %3876 = vmatpush3.bf16.msra.mxu0 %v4244_v1  ;;  %3907 = vmatprep.subr.bf16.mxu1 %v4252_v9  ;;  %v307_v17 = vld [vmem:[%s5008_s15 + $0x18] sm:$0xff]  ;;  %v309_v19 = vld [vmem:[%s5008_s15 + $0x28] sm:$0xff]  ;;  %v310_v23 = vld [vmem:[%s5008_s15 + $0x30] sm:$0xff]  ;;  %p4672_p12 = scmp.lt.s32.totalorder %s5323_s28, %s4670_s29  ;;  %p4673_p2 = scmp.lt.s32.totalorder %s4671_s6, %s4665_s16 }
  0xa4   : > { %3877 = vmatprep.subr.bf16.mxu0 %v4245_v2  ;;  %v4256_v20 = vld [vmem:[#allocation5 + $0x68] sm:$0xff]   ;;  %v338_v21 = vpack.c.bf16 %v307_v17, %v306_v16  ;;  %v339_v22 = vpack.c.bf16 %v309_v19, %v308_v18  ;;  %v311_v24 = vld [vmem:[%s5008_s15 + $0x38] sm:$0xff]  ;;  %v312_v25 = vld [vmem:[%s5008_s15 + $0x40] sm:$0xff]  ;;  %p4668_p7 = pneg %p4667_p5 }
  0xa5   : > { %v313_v26 = vld [vmem:[%s5008_s15 + $0x48] sm:$0xff]  ;;  %v340_v27 = vpack.c.bf16 %v311_v24, %v310_v23  ;;  %v314_v29 = vld [vmem:[%s5008_s15 + $0x50] sm:$0xff]  ;;  %v315_v30 = vld [vmem:[%s5008_s15 + $0x58] sm:$0xff]  ;;  %p4674_p1 = por %p4673_p2, %p4672_p12 }
  0xa6   : > { %3908 = vmatpush3.bf16.msra.mxu1 %v4252_v9  ;;  %v341_v28 = vpack.c.bf16 %v313_v26, %v312_v25  ;;  %v316_v31 = vld [vmem:[%s5008_s15 + $0x60] sm:$0xff]  ;;  %v317_v32 = vld [vmem:[%s5008_s15 + $0x68] sm:$0xff]  ;;  %v342_v33 = vpack.c.bf16 %v315_v30, %v314_v29  ;;  %v318_v35 = vld [vmem:[%s5008_s15 + $0x70] sm:$0xff] }
  0xa7   : > { %3878 = vmatpush3.bf16.msra.mxu0 %v4245_v2  ;;  %3909 = vmatprep.subr.bf16.mxu1 %v4253_v11  ;;  %v343_v34 = vpack.c.bf16 %v317_v32, %v316_v31  ;;  %v319_v36 = vld [vmem:[%s5008_s15 + $0x78] sm:$0xff]  ;;  %v4257_v38 = vld [vmem:[#allocation5 + $0x70] sm:$0xff]   ;;  %v4259_v40 = vld [vmem:[#allocation7] ss:$8 sps:$4 sm:$0xff]   ;;  %p4675_p13 = pnand %p4674_p1, %p4668_p7 }
  0xa8   : > { %3879 = vmatprep.subr.bf16.mxu0 %v4246_v3  ;;  %v344_v37 = vpack.c.bf16 %v319_v36, %v318_v35  ;;  %v4258_v39 = vld [vmem:[#allocation5 + $0x78] sm:$0xff]   ;;  %v4261_v41 = vld [vmem:[#allocation7 + $0x4] ss:$8 sps:$4 sm:$0xff]   ;;  %v4265_v45 = vld [vmem:[#allocation7 + $0x20] ss:$8 sps:$4 sm:$0xff]  }
  0xa9   : > { %v4264_v42 = vld [vmem:[#allocation7 + $0x14] ss:$8 sps:$4 sm:$0xff]   ;;  %v4262_v43 = vld [vmem:[#allocation7 + $0x10] ss:$8 sps:$4 sm:$0xff]   ;;  %v4267_v44 = vld [vmem:[#allocation7 + $0x24] ss:$8 sps:$4 sm:$0xff]  }
  0xaa   : > { %3910 = vmatpush3.bf16.msra.mxu1 %v4253_v11  ;;  %v4270_v46 = vld [vmem:[#allocation7 + $0x34] ss:$8 sps:$4 sm:$0xff]   ;;  %v4268_v47 = vld [vmem:[#allocation7 + $0x30] ss:$8 sps:$4 sm:$0xff]   ;;  %v4273_v48 = vld [vmem:[#allocation7 + $0x44] ss:$8 sps:$4 sm:$0xff]  }
  0xab   : > { %3880 = vmatpush3.bf16.msra.mxu0 %v4246_v3  ;;  %3911 = vmatprep.subr.bf16.mxu1 %v4254_v13  ;;  %v4271_v49 = vld [vmem:[#allocation7 + $0x40] ss:$8 sps:$4 sm:$0xff]   ;;  %v4276_v50 = vld [vmem:[#allocation7 + $0x54] ss:$8 sps:$4 sm:$0xff]   ;;  %v4274_v51 = vld [vmem:[#allocation7 + $0x50] ss:$8 sps:$4 sm:$0xff]  }
  0xac   : > { %3881 = vmatprep.subr.bf16.mxu0 %v4247_v7  ;;  %v336_v52 = vld [vmem:[#allocation10] ss:$0 sm:$0xff] }
  0xae   : > { %3912 = vmatpush3.bf16.msra.mxu1 %v4254_v13 }
  0xaf   : > { %3882 = vmatpush3.bf16.msra.mxu0 %v4247_v7  ;;  %3913 = vmatprep.subr.bf16.mxu1 %v4255_v15 }
  0xb0   : > { %3883 = vmatprep.subr.bf16.mxu0 %v4248_v10 }
  0xb2   : > { %3914 = vmatpush3.bf16.msra.mxu1 %v4255_v15 }
  0xb3   : > { %3884 = vmatpush3.bf16.msra.mxu0 %v4248_v10  ;;  %3915 = vmatprep.subr.bf16.mxu1 %v4256_v20 }
  0xb4   : > { %3885 = vmatprep.subr.bf16.mxu0 %v4249_v12 }
  0xb6   : > { %3916 = vmatpush3.bf16.msra.mxu1 %v4256_v20 }
  0xb7   : > { %3886 = vmatpush3.bf16.msra.mxu0 %v4249_v12  ;;  %3917 = vmatprep.subr.bf16.mxu1 %v4257_v38 }
  0xb8   : > { %3887 = vmatprep.subr.bf16.mxu0 %v4250_v14 }
  0xba   : > { %3918 = vmatpush3.bf16.msra.mxu1 %v4257_v38 }
  0xbb   : > { %3888 = vmatpush3.bf16.msra.mxu0 %v4250_v14  ;;  %3919 = vmatprep.subr.bf16.mxu1 %v4258_v39 }
  0xbc   : > { %809 = vmatprep.subr.bf16.mxu0 %v4261_v41 }
  0xbe   : > { %3890 = vmatmul.mubr.bf16.vlgmr.msra.gmra.mrb[0].mxu0 %v338_v21  ;;  %3920 = vmatpush3.bf16.msra.mxu1 %v4258_v39 }
  0xbf   : > { %3893 = vmatprep.mubr.bf16.mxu0 %v339_v22  ;;  %810 = vmatpush1.bf16.msra.mxu0 %v4259_v40 }
  0xc0   : > { %811 = vmatprep.subr.bf16.mxu0 %v4264_v42 }
  0xc3   : > { %812 = vmatpush1.bf16.msra.mxu0 %v4262_v43 }
  0xc4   : > { %813 = vmatprep.subr.bf16.mxu0 %v4267_v44 }
  0xc6   : > { %3894 = vmatmul.mubr.bf16.gmra.mrb[4].mxu0 %v340_v27 }
  0xc7   : > { %3897 = vmatprep.mubr.bf16.mxu0 %v341_v28  ;;  %814 = vmatpush1.bf16.msra.mxu0 %v4265_v45  ;;  %v4279_v45 = vld [vmem:[#allocation7 + $0x64] ss:$8 sps:$4 sm:$0xff]  }
  0xc8   : > { %815 = vmatprep.subr.bf16.mxu0 %v4270_v46  ;;  %v4277_v46 = vld [vmem:[#allocation7 + $0x60] ss:$8 sps:$4 sm:$0xff]  }
  0xcb   : > { %816 = vmatpush1.bf16.msra.mxu0 %v4268_v47  ;;  %v4282_v47 = vld [vmem:[#allocation7 + $0x74] ss:$8 sps:$4 sm:$0xff]  }
  0xcc   : > { %817 = vmatprep.subr.bf16.mxu0 %v4273_v48  ;;  %v4280_v48 = vld [vmem:[#allocation7 + $0x70] ss:$8 sps:$4 sm:$0xff]  }
  0xce   : > { %3898 = vmatmul.mubr.bf16.gmra.mrb[8].mxu0 %v342_v33 }
  0xcf   : > { %3901 = vmatprep.mubr.bf16.mxu0 %v343_v34  ;;  %818 = vmatpush1.bf16.msra.mxu0 %v4271_v49  ;;  %v4754_v49 = vmov 0  }
  0xd0   : > { %819 = vmatprep.subr.bf16.mxu0 %v4276_v50  ;;  %v4283_v50 = vld [vmem:[#allocation8] ss:$16 sps:$4 sm:$0xff]  }
  0xd3   : > { %820 = vmatpush1.bf16.msra.mxu0 %v4274_v51  ;;  %v4285_v51 = vld [vmem:[#allocation8 + $0x4] ss:$16 sps:$4 sm:$0xff]  }
  0xd4   : > { %821 = vmatprep.subr.bf16.mxu0 %v4279_v45  ;;  %1377 = vmatprep.subr.bf16.mxu1 %v4285_v51  ;;  %v4306_v51 = vld [vmem:[#allocation8 + $0x6c] ss:$16 sps:$4 sm:$0xff]  }
  0xd6   : > { %3902 = vmatmul.mubr.bf16.gmra.mrb[12].mxu0 %v344_v37 }
  0xd7   : > { %822 = vmatpush1.bf16.msra.mxu0 %v4277_v46  ;;  %841 = vmatprep.mubr.bf16.mxu0 %v4754_v49 }
  0xd8   : > { %823 = vmatprep.subr.bf16.mxu0 %v4282_v47  ;;  %v4298_v47 = vld [vmem:[#allocation8 + $0x48] ss:$16 sps:$4 sm:$0xff]  }
  0xdb   : > { %824 = vmatpush1.bf16.msra.mxu0 %v4280_v48 }
 0x191   : > { %v3891_v53 = vpop.f32.mrb[0].mxu0 }
 0x192   : > { %v436_v54 = vadd.f32 %v3891_v53, %v336_v52  ;;  %v427_v55 = vpop.f32.mrb[1].mxu0  ;;  %v4291_v53 = vld [vmem:[#allocation8 + $0x24] ss:$16 sps:$4 sm:$0xff]  }
 0x193   : > { %v428_v56 = vadd.f32 %v427_v55, %v336_v52  ;;  %v3892_v57 = vpop.f32.mrb[2].mxu0  ;;  %v4297_v55 = vld [vmem:[#allocation8 + $0x44] ss:$16 sps:$4 sm:$0xff]  }
 0x194   : > { %v439_v58 = vadd.f32 %v3892_v57, %v336_v52  ;;  %v430_v59 = vpop.f32.mrb[3].mxu0  ;;  %v492_v61 = vmax.f32 %v436_v54, 0.0  ;;  %v4289_v54 = vld [vmem:[#allocation8 + $0x20] ss:$16 sps:$4 sm:$0xff]   ;;  %v4303_v57 = vld [vmem:[#allocation8 + $0x64] ss:$16 sps:$4 sm:$0xff]  }
 0x195   : > { %v431_v60 = vadd.f32 %v430_v59, %v336_v52  ;;  %v490_v63 = vmax.f32 %v428_v56, 0.0  ;;  %v4295_v56 = vld [vmem:[#allocation8 + $0x40] ss:$16 sps:$4 sm:$0xff]   ;;  %v4309_v59 = vld [vmem:[#allocation8 + $0x84] ss:$16 sps:$4 sm:$0xff]  }
 0x196   : > { %v493_v62 = vmax.f32 %v439_v58, 0.0  ;;  %v4301_v58 = vld [vmem:[#allocation8 + $0x60] ss:$16 sps:$4 sm:$0xff]  }
 0x197   : > { %v491_v0 = vmax.f32 %v431_v60, 0.0  ;;  %v4307_v60 = vld [vmem:[#allocation8 + $0x80] ss:$16 sps:$4 sm:$0xff]  }
 0x198   : > { %v524_v1 = vpack.c.bf16 %v493_v62, %v492_v61  ;;  %v4315_v61 = vld [vmem:[#allocation8 + $0xa4] ss:$16 sps:$4 sm:$0xff]   ;;  %v4313_v62 = vld [vmem:[#allocation8 + $0xa0] ss:$16 sps:$4 sm:$0xff]  }
 0x199   : > { %v3895_v2 = vpop.f32.mrb[4].mxu0  ;;  %v523_v3 = vpack.c.bf16 %v491_v0, %v490_v63  ;;  %v4321_v63 = vld [vmem:[#allocation8 + $0xc4] ss:$16 sps:$4 sm:$0xff]   ;;  %v4319_v0 = vld [vmem:[#allocation8 + $0xc0] ss:$16 sps:$4 sm:$0xff]  }
 0x19a   : > { %v452_v4 = vadd.f32 %v3895_v2, %v336_v52  ;;  %v443_v5 = vpop.f32.mrb[5].mxu0  ;;  %v4325_v2 = vld [vmem:[#allocation8 + $0xe0] ss:$16 sps:$4 sm:$0xff]  }
 0x19b   : > { %v444_v6 = vadd.f32 %v443_v5, %v336_v52  ;;  %3921 = vmatprep.mubr.bf16.mxu1 %v523_v3  ;;  %v3896_v7 = vpop.f32.mrb[6].mxu0  ;;  %v4333_v3 = vld [vmem:[#allocation8 + $0x104] ss:$16 sps:$4 sm:$0xff]  }
 0x19c   : > { %v496_v8 = vmax.f32 %v452_v4, 0.0  ;;  %v455_v9 = vadd.f32 %v3896_v7, %v336_v52  ;;  %3922 = vmatmul.mubr.bf16.vlgmr.msra.gmra.mrb[0].mxu1 %v524_v1  ;;  %v446_v10 = vpop.f32.mrb[7].mxu0  ;;  %v4327_v1 = vld [vmem:[#allocation8 + $0xe4] ss:$16 sps:$4 sm:$0xff]   ;;  %v4331_v4 = vld [vmem:[#allocation8 + $0x100] ss:$16 sps:$4 sm:$0xff]  }
 0x19d   : > { %v494_v11 = vmax.f32 %v444_v6, 0.0  ;;  %v447_v12 = vadd.f32 %v446_v10, %v336_v52  ;;  %1378 = vmatpush1.bf16.msra.mxu1 %v4283_v50  ;;  %v4339_v5 = vld [vmem:[#allocation8 + $0x124] ss:$16 sps:$4 sm:$0xff]   ;;  %v4337_v6 = vld [vmem:[#allocation8 + $0x120] ss:$16 sps:$4 sm:$0xff]  }
 0x19e   : > { %v497_v13 = vmax.f32 %v455_v9, 0.0  ;;  %1379 = vmatprep.subr.bf16.mxu1 %v4291_v53  ;;  %v4345_v7 = vld [vmem:[#allocation8 + $0x144] ss:$16 sps:$4 sm:$0xff]   ;;  %v4349_v10 = vld [vmem:[#allocation8 + $0x160] ss:$16 sps:$4 sm:$0xff]  }
 0x19f   : > { %v495_v14 = vmax.f32 %v447_v12, 0.0  ;;  %v4351_v9 = vld [vmem:[#allocation8 + $0x164] ss:$16 sps:$4 sm:$0xff]   ;;  %v4355_v12 = vld [vmem:[#allocation8 + $0x180] ss:$16 sps:$4 sm:$0xff]  }
 0x1a0   : > { %v526_v15 = vpack.c.bf16 %v497_v13, %v496_v8  ;;  %v4343_v8 = vld [vmem:[#allocation8 + $0x140] ss:$16 sps:$4 sm:$0xff]   ;;  %v4363_v13 = vld [vmem:[#allocation8 + $0x1a4] ss:$16 sps:$4 sm:$0xff]  }
 0x1a1   : > { %v525_v16 = vpack.c.bf16 %v495_v14, %v494_v11  ;;  %v3899_v17 = vpop.f32.mrb[8].mxu0  ;;  %1380 = vmatpush1.bf16.msra.mxu1 %v4289_v54  ;;  %v4357_v11 = vld [vmem:[#allocation8 + $0x184] ss:$16 sps:$4 sm:$0xff]   ;;  %v4361_v14 = vld [vmem:[#allocation8 + $0x1a0] ss:$16 sps:$4 sm:$0xff]  }
 0x1a2   : > { %v468_v18 = vadd.f32 %v3899_v17, %v336_v52  ;;  %v459_v19 = vpop.f32.mrb[9].mxu0  ;;  %1381 = vmatprep.subr.bf16.mxu1 %v4297_v55 }
 0x1a3   : > { %3925 = vmatprep.mubr.bf16.mxu1 %v525_v16  ;;  %v460_v20 = vadd.f32 %v459_v19, %v336_v52  ;;  %v3900_v21 = vpop.f32.mrb[10].mxu0 }
 0x1a4   : > { %3926 = vmatmul.mubr.bf16.gmra.mrb[4].mxu1 %v526_v15  ;;  %v500_v22 = vmax.f32 %v468_v18, 0.0  ;;  %v471_v23 = vadd.f32 %v3900_v21, %v336_v52  ;;  %v462_v24 = vpop.f32.mrb[11].mxu0  ;;  %v5039_v15 = vld [vmem:[#allocation10 + $0x1] ss:$0 sm:$0xff] }
 0x1a5   : > { %v498_v25 = vmax.f32 %v460_v20, 0.0  ;;  %v463_v26 = vadd.f32 %v462_v24, %v336_v52  ;;  %1382 = vmatpush1.bf16.msra.mxu1 %v4295_v56 }
 0x1a6   : > { %v501_v27 = vmax.f32 %v471_v23, 0.0  ;;  %1383 = vmatprep.subr.bf16.mxu1 %v4303_v57 }
 0x1a7   : > { %v499_v28 = vmax.f32 %v463_v26, 0.0 }
 0x1a8   : > { %v528_v29 = vpack.c.bf16 %v501_v27, %v500_v22 }
 0x1a9   : > { %v527_v30 = vpack.c.bf16 %v499_v28, %v498_v25  ;;  %v3903_v31 = vpop.f32.mrb[12].mxu0  ;;  %1384 = vmatpush1.bf16.msra.mxu1 %v4301_v58 }
 0x1aa   : > { %v484_v32 = vadd.f32 %v3903_v31, %v336_v52  ;;  %v475_v33 = vpop.f32.mrb[13].mxu0  ;;  %1385 = vmatprep.subr.bf16.mxu1 %v4309_v59  ;;  %v4304_v59 = vld [vmem:[#allocation8 + $0x68] ss:$16 sps:$4 sm:$0xff]  }
 0x1ab   : > { %3929 = vmatprep.mubr.bf16.mxu1 %v527_v30  ;;  %v476_v34 = vadd.f32 %v475_v33, %v336_v52  ;;  %v3904_v35 = vpop.f32.mrb[14].mxu0 }
 0x1ac   : > { %3930 = vmatmul.mubr.bf16.gmra.mrb[8].mxu1 %v528_v29  ;;  %v504_v36 = vmax.f32 %v484_v32, 0.0  ;;  %v487_v37 = vadd.f32 %v3904_v35, %v336_v52  ;;  %v478_v38 = vpop.f32.mrb[15].mxu0  ;;  %v4286_v29 = vld [vmem:[#allocation8 + $0x8] ss:$16 sps:$4 sm:$0xff]   ;;  %v4294_v32 = vld [vmem:[#allocation8 + $0x2c] ss:$16 sps:$4 sm:$0xff]  }
 0x1ad   : > { %v502_v39 = vmax.f32 %v476_v34, 0.0  ;;  %v479_v40 = vadd.f32 %v478_v38, %v336_v52  ;;  %v4288_v52 = vld [vmem:[#allocation8 + $0xc] ss:$16 sps:$4 sm:$0xff]   ;;  %1386 = vmatpush1.bf16.msra.mxu1 %v4307_v60 }
 0x1ae   : > { %v505_v41 = vmax.f32 %v487_v37, 0.0  ;;  %1490 = vmatprep.subr.bf16.mxu0 %v4288_v52  ;;  %1387 = vmatprep.subr.bf16.mxu1 %v4315_v61 }
 0x1af   : > { %v503_v42 = vmax.f32 %v479_v40, 0.0  ;;  %v4292_v40 = vld [vmem:[#allocation8 + $0x28] ss:$16 sps:$4 sm:$0xff]  }
 0x1b0   : > { %v530_v43 = vpack.c.bf16 %v505_v41, %v504_v36 }
 0x1b1   : > { %v529_v44 = vpack.c.bf16 %v503_v42, %v502_v39  ;;  %1388 = vmatpush1.bf16.msra.mxu1 %v4313_v62  ;;  %v4312_v62 = vld [vmem:[#allocation8 + $0x8c] ss:$16 sps:$4 sm:$0xff]  }
 0x1b2   : > { %1389 = vmatprep.subr.bf16.mxu1 %v4321_v63 }
 0x1b3   : > { %3933 = vmatprep.mubr.bf16.mxu1 %v529_v44 }
 0x1b4   : > { %3934 = vmatmul.mubr.bf16.gmra.mrb[12].mxu1 %v530_v43  ;;  %v4300_v43 = vld [vmem:[#allocation8 + $0x4c] ss:$16 sps:$4 sm:$0xff]  }
 0x1b5   : > { %1390 = vmatpush1.bf16.msra.mxu1 %v4319_v0 }
 0x1b6   : > { %1391 = vmatprep.subr.bf16.mxu1 %v4327_v1 }
 0x1b9   : > { %1392 = vmatpush1.bf16.msra.mxu1 %v4325_v2  ;;  %v4310_v2 = vld [vmem:[#allocation8 + $0x88] ss:$16 sps:$4 sm:$0xff]  }
 0x1ba   : > { %1393 = vmatprep.subr.bf16.mxu1 %v4333_v3 }
 0x1bd   : > { %1394 = vmatpush1.bf16.msra.mxu1 %v4331_v4 }
 0x1be   : > { %1395 = vmatprep.subr.bf16.mxu1 %v4339_v5  ;;  %v4318_v5 = vld [vmem:[#allocation8 + $0xac] ss:$16 sps:$4 sm:$0xff]  }
 0x1c1   : > { %1396 = vmatpush1.bf16.msra.mxu1 %v4337_v6 }
 0x1c2   : > { %1397 = vmatprep.subr.bf16.mxu1 %v4345_v7 }
 0x1c5   : > { %1398 = vmatpush1.bf16.msra.mxu1 %v4343_v8 }
 0x1c6   : > { %1399 = vmatprep.subr.bf16.mxu1 %v4351_v9 }
 0x1c9   : > { %1400 = vmatpush1.bf16.msra.mxu1 %v4349_v10 }
 0x1ca   : > { %1401 = vmatprep.subr.bf16.mxu1 %v4357_v11 }
 0x1cd   : > { %1402 = vmatpush1.bf16.msra.mxu1 %v4355_v12 }
 0x1ce   : > { %1403 = vmatprep.subr.bf16.mxu1 %v4363_v13  ;;  %v4316_v13 = vld [vmem:[#allocation8 + $0xa8] ss:$16 sps:$4 sm:$0xff]  }
 0x1d1   : > { %1404 = vmatpush1.bf16.msra.mxu1 %v4361_v14 }
 0x26f   : > { %v3923_v16 = vpop.f32.mrb[0].mxu1 }
 0x270   : > { %v622_v17 = vadd.f32 %v3923_v16, %v5039_v15  ;;  %v613_v18 = vpop.f32.mrb[1].mxu1 }
 0x271   : > { %v614_v19 = vadd.f32 %v613_v18, %v5039_v15  ;;  %v3924_v20 = vpop.f32.mrb[2].mxu1 }
 0x272   : > { %v625_v21 = vadd.f32 %v3924_v20, %v5039_v15  ;;  %v616_v22 = vpop.f32.mrb[3].mxu1  ;;  %v678_v24 = vmax.f32 %v622_v17, 0.0  ;;  %v4324_v17 = vld [vmem:[#allocation8 + $0xcc] ss:$16 sps:$4 sm:$0xff]  }
 0x273   : > { %v617_v23 = vadd.f32 %v616_v22, %v5039_v15  ;;  %v676_v26 = vmax.f32 %v614_v19, 0.0 }
 0x274   : > { %v679_v25 = vmax.f32 %v625_v21, 0.0  ;;  %v4322_v21 = vld [vmem:[#allocation8 + $0xc8] ss:$16 sps:$4 sm:$0xff]  }
 0x275   : > { %v677_v27 = vmax.f32 %v617_v23, 0.0  ;;  %v4330_v23 = vld [vmem:[#allocation8 + $0xec] ss:$16 sps:$4 sm:$0xff]  }
 0x276   : > { %v711_v28 = vpack.c.bf16 %v679_v25, %v678_v24  ;;  %v4328_v24 = vld [vmem:[#allocation8 + $0xe8] ss:$16 sps:$4 sm:$0xff]   ;;  %v4336_v25 = vld [vmem:[#allocation8 + $0x10c] ss:$16 sps:$4 sm:$0xff]  }
 0x277   : > { %v710_v30 = vpack.c.bf16 %v677_v27, %v676_v26  ;;  %v3927_v31 = vpop.f32.mrb[4].mxu1  ;;  %v4334_v26 = vld [vmem:[#allocation8 + $0x108] ss:$16 sps:$4 sm:$0xff]  }
 0x278   : > { %v638_v33 = vadd.f32 %v3927_v31, %v5039_v15  ;;  %v629_v34 = vpop.f32.mrb[5].mxu1  ;;  %v4340_v27 = vld [vmem:[#allocation8 + $0x128] ss:$16 sps:$4 sm:$0xff]  }
 0x279   : > { %v630_v35 = vadd.f32 %v629_v34, %v5039_v15  ;;  %842 = vmatmul.mubr.bf16.vlgmr.msra.gmra.mrb[16].mxu0 %v710_v30  ;;  %v3928_v36 = vpop.f32.mrb[6].mxu1  ;;  %v4354_v30 = vld [vmem:[#allocation8 + $0x16c] ss:$16 sps:$4 sm:$0xff]   ;;  %v4352_v31 = vld [vmem:[#allocation8 + $0x168] ss:$16 sps:$4 sm:$0xff]  }
 0x27a   : > { %v682_v37 = vmax.f32 %v638_v33, 0.0  ;;  %v641_v38 = vadd.f32 %v3928_v36, %v5039_v15  ;;  %v632_v39 = vpop.f32.mrb[7].mxu1  ;;  %851 = vmatprep.mubr.bf16.mxu0 %v4754_v49  ;;  %1491 = vmatpush1.bf16.msra.mxu0 %v4286_v29  ;;  %v4346_v29 = vld [vmem:[#allocation8 + $0x148] ss:$16 sps:$4 sm:$0xff]   ;;  %v4366_v34 = vld [vmem:[#allocation8 + $0x1ac] ss:$16 sps:$4 sm:$0xff]  }
 0x27b   : > { %v680_v41 = vmax.f32 %v630_v35, 0.0  ;;  %v633_v42 = vadd.f32 %v632_v39, %v5039_v15  ;;  %1492 = vmatprep.subr.bf16.mxu0 %v4294_v32  ;;  %v4360_v32 = vld [vmem:[#allocation8 + $0x18c] ss:$16 sps:$4 sm:$0xff]   ;;  %v4358_v33 = vld [vmem:[#allocation8 + $0x188] ss:$16 sps:$4 sm:$0xff]  }
 0x27c   : > { %v683_v44 = vmax.f32 %v641_v38, 0.0  ;;  %v4364_v35 = vld [vmem:[#allocation8 + $0x1a8] ss:$16 sps:$4 sm:$0xff]   ;;  %v4369_v36 = vld [vmem:[#allocation8 + $0x1c4] ss:$16 sps:$4 sm:$0xff]  }
 0x27d   : > { %v681_v45 = vmax.f32 %v633_v42, 0.0  ;;  %v4367_v38 = vld [vmem:[#allocation8 + $0x1c0] ss:$16 sps:$4 sm:$0xff]   ;;  %v4370_v39 = vld [vmem:[#allocation8 + $0x1c8] ss:$16 sps:$4 sm:$0xff]   ;;  %1405 = vmatprep.subr.bf16.mxu1 %v4369_v36 }
 0x27e   : > { %v713_v46 = vpack.c.bf16 %v683_v44, %v682_v37  ;;  %1493 = vmatpush1.bf16.msra.mxu0 %v4292_v40  ;;  %v4372_v37 = vld [vmem:[#allocation8 + $0x1cc] ss:$16 sps:$4 sm:$0xff]   ;;  %1406 = vmatpush1.bf16.msra.mxu1 %v4367_v38  ;;  %v4375_v40 = vld [vmem:[#allocation8 + $0x1e4] ss:$16 sps:$4 sm:$0xff]   ;;  %v4373_v42 = vld [vmem:[#allocation8 + $0x1e0] ss:$16 sps:$4 sm:$0xff]   ;;  %v719_v44 = vlaneseq }
 0x27f   : > { %v712_v48 = vpack.c.bf16 %v681_v45, %v680_v41  ;;  %v3931_v50 = vpop.f32.mrb[8].mxu1  ;;  %1494 = vmatprep.subr.bf16.mxu0 %v4300_v43  ;;  %v4378_v41 = vld [vmem:[#allocation8 + $0x1ec] ss:$16 sps:$4 sm:$0xff]   ;;  %v4376_v43 = vld [vmem:[#allocation8 + $0x1e8] ss:$16 sps:$4 sm:$0xff]   ;;  %1407 = vmatprep.subr.bf16.mxu1 %v4375_v40 }
 0x280   : > { %v654_v52 = vadd.f32 %v3931_v50, %v5039_v15  ;;  %v645_v53 = vpop.f32.mrb[9].mxu1  ;;  %v5064_v45 = vshrl.u32 %v719_v44, 7 }
 0x281   : > { %852 = vmatmul.mubr.bf16.gmra.mrb[20].mxu0 %v711_v28  ;;  %v646_v54 = vadd.f32 %v645_v53, %v5039_v15  ;;  %v3932_v55 = vpop.f32.mrb[10].mxu1  ;;  %v4348_v28 = vld [vmem:[#allocation8 + $0x14c] ss:$16 sps:$4 sm:$0xff]  }
 0x282   : > { %v686_v56 = vmax.f32 %v654_v52, 0.0  ;;  %861 = vmatprep.mubr.bf16.mxu0 %v4754_v49  ;;  %v657_v57 = vadd.f32 %v3932_v55, %v5039_v15  ;;  %v648_v58 = vpop.f32.mrb[11].mxu1  ;;  %1495 = vmatpush1.bf16.msra.mxu0 %v4298_v47  ;;  %v709_v47 = vld [vmem:[#allocation10 + $0x2] ss:$8 sm:$0x3] }
 0x283   : > { %v684_v60 = vmax.f32 %v646_v54, 0.0  ;;  %v649_v61 = vadd.f32 %v648_v58, %v5039_v15  ;;  %1496 = vmatprep.subr.bf16.mxu0 %v4306_v51  ;;  %1408 = vmatpush1.bf16.msra.mxu1 %v4373_v42  ;;  %v4396_v42 = vld [vmem:[#allocation7 + $0xd4] ss:$8 sps:$4 sm:$0xff]  }
 0x284   : > { %v687_v63 = vmax.f32 %v657_v57, 0.0 }
 0x285   : > { %v685_v0 = vmax.f32 %v649_v61, 0.0 }
 0x286   : > { %v715_v1 = vpack.c.bf16 %v687_v63, %v686_v56  ;;  %1497 = vmatpush1.bf16.msra.mxu0 %v4304_v59 }
 0x287   : > { %v714_v3 = vpack.c.bf16 %v685_v0, %v684_v60  ;;  %v3935_v4 = vpop.f32.mrb[12].mxu1  ;;  %1498 = vmatprep.subr.bf16.mxu0 %v4312_v62 }
 0x288   : > { %v670_v6 = vadd.f32 %v3935_v4, %v5039_v15  ;;  %v661_v7 = vpop.f32.mrb[13].mxu1 }
 0x289   : > { %862 = vmatmul.mubr.bf16.gmra.mrb[24].mxu0 %v712_v48  ;;  %v662_v8 = vadd.f32 %v661_v7, %v5039_v15  ;;  %v3936_v9 = vpop.f32.mrb[14].mxu1  ;;  %v5070_v48 = vsub.s32 1, %v5064_v45 }
 0x28a   : > { %871 = vmatprep.mubr.bf16.mxu0 %v4754_v49  ;;  %v690_v10 = vmax.f32 %v670_v6, 0.0  ;;  %v673_v11 = vadd.f32 %v3936_v9, %v5039_v15  ;;  %v664_v12 = vpop.f32.mrb[15].mxu1  ;;  %1499 = vmatpush1.bf16.msra.mxu0 %v4310_v2  ;;  %v4384_v6 = vld [vmem:[#allocation7 + $0x94] ss:$8 sps:$4 sm:$0xff]  }
 0x28b   : > { %v688_v14 = vmax.f32 %v662_v8, 0.0  ;;  %v665_v16 = vadd.f32 %v664_v12, %v5039_v15  ;;  %1500 = vmatprep.subr.bf16.mxu0 %v4318_v5  ;;  %v4342_v15 = vld [vmem:[#allocation8 + $0x12c] ss:$16 sps:$4 sm:$0xff]   ;;  %v5076_v51 = vrot.slane %v709_v47, %v5070_v48  ;;  %v4382_v12 = vld [vmem:[#allocation7 + $0x90] ss:$8 sps:$4 sm:$0xff]  }
 0x28c   : > { %v691_v18 = vmax.f32 %v673_v11, 0.0 }
 0x28d   : > { %v689_v19 = vmax.f32 %v665_v16, 0.0  ;;  %v4387_v16 = vld [vmem:[#allocation7 + $0xa4] ss:$8 sps:$4 sm:$0xff]  }
 0x28e   : > { %v717_v20 = vpack.c.bf16 %v691_v18, %v690_v10  ;;  %1501 = vmatpush1.bf16.msra.mxu0 %v4316_v13 }
 0x28f   : > { %v716_v22 = vpack.c.bf16 %v689_v19, %v688_v14  ;;  %1502 = vmatprep.subr.bf16.mxu0 %v4324_v17 }
 0x291   : > { %872 = vmatmul.mubr.bf16.gmra.mrb[28].mxu0 %v713_v46  ;;  %v5067_v46 = vsub.s32 0, %v5064_v45 }
 0x292   : > { %881 = vmatprep.mubr.bf16.mxu0 %v4754_v49  ;;  %1503 = vmatpush1.bf16.msra.mxu0 %v4322_v21 }
 0x293   : > { %1504 = vmatprep.subr.bf16.mxu0 %v4330_v23  ;;  %v5073_v50 = vrot.slane %v709_v47, %v5067_v46 }
 0x296   : > { %1505 = vmatpush1.bf16.msra.mxu0 %v4328_v24 }
 0x297   : > { %1506 = vmatprep.subr.bf16.mxu0 %v4336_v25  ;;  %v4390_v25 = vld [vmem:[#allocation7 + $0xb4] ss:$8 sps:$4 sm:$0xff]  }
 0x299   : > { %882 = vmatmul.mubr.bf16.gmra.mrb[32].mxu0 %v714_v3  ;;  %v4379_v3 = vld [vmem:[#allocation7 + $0x80] ss:$8 sps:$4 sm:$0xff]  }
 0x29a   : > { %891 = vmatprep.mubr.bf16.mxu0 %v4754_v49  ;;  %1507 = vmatpush1.bf16.msra.mxu0 %v4334_v26 }
 0x29b   : > { %1508 = vmatprep.subr.bf16.mxu0 %v4342_v15 }
 0x29e   : > { %1509 = vmatpush1.bf16.msra.mxu0 %v4340_v27 }
 0x29f   : > { %1510 = vmatprep.subr.bf16.mxu0 %v4348_v28 }
 0x2a1   : > { %892 = vmatmul.mubr.bf16.gmra.mrb[36].mxu0 %v715_v1 }
 0x2a2   : > { %901 = vmatprep.mubr.bf16.mxu0 %v4754_v49  ;;  %1511 = vmatpush1.bf16.msra.mxu0 %v4346_v29 }
 0x2a3   : > { %1512 = vmatprep.subr.bf16.mxu0 %v4354_v30  ;;  %v4388_v30 = vld [vmem:[#allocation7 + $0xb0] ss:$8 sps:$4 sm:$0xff]  }
 0x2a6   : > { %1513 = vmatpush1.bf16.msra.mxu0 %v4352_v31 }
 0x2a7   : > { %1514 = vmatprep.subr.bf16.mxu0 %v4360_v32 }
 0x2a9   : > { %902 = vmatmul.mubr.bf16.gmra.mrb[40].mxu0 %v716_v22  ;;  %v4385_v22 = vld [vmem:[#allocation7 + $0xa0] ss:$8 sps:$4 sm:$0xff]  }
 0x2aa   : > { %911 = vmatprep.mubr.bf16.mxu0 %v4754_v49  ;;  %1515 = vmatpush1.bf16.msra.mxu0 %v4358_v33  ;;  %v4381_v49 = vld [vmem:[#allocation7 + $0x84] ss:$8 sps:$4 sm:$0xff]  }
 0x2ab   : > { %1516 = vmatprep.subr.bf16.mxu0 %v4366_v34  ;;  %2096 = vmatprep.subr.bf16.mxu1 %v4381_v49  ;;  %v4393_v33 = vld [vmem:[#allocation7 + $0xc4] ss:$8 sps:$4 sm:$0xff]  }
 0x2ae   : > { %1517 = vmatpush1.bf16.msra.mxu0 %v4364_v35 }
 0x2af   : > { %1518 = vmatprep.subr.bf16.mxu0 %v4372_v37 }
 0x2b1   : > { %912 = vmatmul.mubr.bf16.gmra.mrb[44].mxu0 %v717_v20 }
 0x2b2   : > { %1519 = vmatpush1.bf16.msra.mxu0 %v4370_v39  ;;  %v4391_v39 = vld [vmem:[#allocation7 + $0xc0] ss:$8 sps:$4 sm:$0xff]  }
 0x2b3   : > { %1520 = vmatprep.subr.bf16.mxu0 %v4378_v41 }
 0x2b6   : > { %1521 = vmatpush1.bf16.msra.mxu0 %v4376_v43 }
 0x34c   : > { %v843_v52 = vpop.f32.mrb[16].mxu0 }
 0x34d   : > { %v844_v53 = vadd.f32 %v843_v52, %v5073_v50  ;;  %v845_v54 = vpop.f32.mrb[17].mxu0 }
 0x34e   : > { %v846_v55 = vadd.f32 %v845_v54, %v5076_v51  ;;  %v847_v56 = vpop.f32.mrb[18].mxu0 }
 0x34f   : > { %v848_v57 = vadd.f32 %v847_v56, %v5073_v50  ;;  %v849_v58 = vpop.f32.mrb[19].mxu0  ;;  %v922_v60 = vmax.f32 %v844_v53, 0.0  ;;  %v4394_v53 = vld [vmem:[#allocation7 + $0xd0] ss:$8 sps:$4 sm:$0xff]   ;;  %v4399_v56 = vld [vmem:[#allocation7 + $0xe4] ss:$8 sps:$4 sm:$0xff]  }
 0x350   : > { %v850_v59 = vadd.f32 %v849_v58, %v5076_v51  ;;  %v923_v62 = vmax.f32 %v846_v55, 0.0 }
 0x351   : > { %v924_v61 = vmax.f32 %v848_v57, 0.0 }
 0x352   : > { %v925_v63 = vmax.f32 %v850_v59, 0.0 }
 0x353   : > { %v1020_v0 = vpack.c.bf16 %v924_v61, %v922_v60 }
 0x354   : > { %v1021_v1 = vpack.c.bf16 %v925_v63, %v923_v62  ;;  %v853_v2 = vpop.f32.mrb[20].mxu0  ;;  %v4397_v62 = vld [vmem:[#allocation7 + $0xe0] ss:$8 sps:$4 sm:$0xff]  }
 0x355   : > { %v854_v4 = vadd.f32 %v853_v2, %v5073_v50  ;;  %v855_v5 = vpop.f32.mrb[21].mxu0 }
 0x356   : > { %v856_v7 = vadd.f32 %v855_v5, %v5076_v51  ;;  %v857_v8 = vpop.f32.mrb[22].mxu0  ;;  %1409 = vmatprep.mubr.bf16.mxu1 %v1021_v1  ;;  %1522 = vmatprep.mubr.bf16.mxu0 %v1021_v1  ;;  %v4402_v1 = vld [vmem:[#allocation7 + $0xf4] ss:$8 sps:$4 sm:$0xff]  }
 0x357   : > { %v858_v9 = vadd.f32 %v857_v8, %v5073_v50  ;;  %v859_v10 = vpop.f32.mrb[23].mxu0  ;;  %1410 = vmatmul.mubr.bf16.vlgmr.msra.gmra.mrb[16].mxu1 %v1020_v0  ;;  %1523 = vmatmul.mubr.bf16.vlgmr.msra.gmra.mrb[48].mxu0 %v1020_v0  ;;  %v926_v13 = vmax.f32 %v854_v4, 0.0 }
 0x358   : > { %v860_v11 = vadd.f32 %v859_v10, %v5076_v51  ;;  %2097 = vmatpush1.bf16.msra.mxu1 %v4379_v3  ;;  %v927_v17 = vmax.f32 %v856_v7, 0.0  ;;  %v4400_v7 = vld [vmem:[#allocation7 + $0xf0] ss:$8 sps:$4 sm:$0xff]   ;;  %v4405_v10 = vld [vmem:[#allocation7 + $0x104] ss:$8 sps:$4 sm:$0xff]  }
 0x359   : > { %v928_v14 = vmax.f32 %v858_v9, 0.0  ;;  %2098 = vmatprep.subr.bf16.mxu1 %v4384_v6 }
 0x35a   : > { %v929_v18 = vmax.f32 %v860_v11, 0.0 }
 0x35b   : > { %v1022_v19 = vpack.c.bf16 %v928_v14, %v926_v13 }
 0x35c   : > { %v1023_v20 = vpack.c.bf16 %v929_v18, %v927_v17  ;;  %v863_v21 = vpop.f32.mrb[24].mxu0  ;;  %2099 = vmatpush1.bf16.msra.mxu1 %v4382_v12  ;;  %v4403_v17 = vld [vmem:[#allocation7 + $0x100] ss:$8 sps:$4 sm:$0xff]  }
 0x35d   : > { %v864_v23 = vadd.f32 %v863_v21, %v5073_v50  ;;  %v865_v24 = vpop.f32.mrb[25].mxu0  ;;  %2100 = vmatprep.subr.bf16.mxu1 %v4387_v16 }
 0x35e   : > { %v866_v26 = vadd.f32 %v865_v24, %v5076_v51  ;;  %v867_v15 = vpop.f32.mrb[26].mxu0  ;;  %1419 = vmatprep.mubr.bf16.mxu1 %v1023_v20  ;;  %1532 = vmatprep.mubr.bf16.mxu0 %v1023_v20  ;;  %v4408_v20 = vld [vmem:[#allocation7 + $0x114] ss:$8 sps:$4 sm:$0xff]  }
 0x35f   : > { %v868_v27 = vadd.f32 %v867_v15, %v5073_v50  ;;  %v869_v28 = vpop.f32.mrb[27].mxu0  ;;  %1420 = vmatmul.mubr.bf16.gmra.mrb[20].mxu1 %v1022_v19  ;;  %1533 = vmatmul.mubr.bf16.gmra.mrb[52].mxu0 %v1022_v19  ;;  %v930_v31 = vmax.f32 %v864_v23, 0.0 }
 0x360   : > { %v870_v29 = vadd.f32 %v869_v28, %v5076_v51  ;;  %2101 = vmatpush1.bf16.msra.mxu1 %v4385_v22  ;;  %v931_v34 = vmax.f32 %v866_v26, 0.0  ;;  %v4406_v26 = vld [vmem:[#allocation7 + $0x110] ss:$8 sps:$4 sm:$0xff]   ;;  %v4411_v28 = vld [vmem:[#allocation7 + $0x124] ss:$8 sps:$4 sm:$0xff]  }
 0x361   : > { %v932_v32 = vmax.f32 %v868_v27, 0.0  ;;  %2102 = vmatprep.subr.bf16.mxu1 %v4390_v25 }
 0x362   : > { %v933_v35 = vmax.f32 %v870_v29, 0.0 }
 0x363   : > { %v1024_v36 = vpack.c.bf16 %v932_v32, %v930_v31 }
 0x364   : > { %v1025_v37 = vpack.c.bf16 %v933_v35, %v931_v34  ;;  %v873_v38 = vpop.f32.mrb[28].mxu0  ;;  %2103 = vmatpush1.bf16.msra.mxu1 %v4388_v30  ;;  %v4409_v34 = vld [vmem:[#allocation7 + $0x120] ss:$8 sps:$4 sm:$0xff]  }
 0x365   : > { %v874_v40 = vadd.f32 %v873_v38, %v5073_v50  ;;  %v875_v41 = vpop.f32.mrb[29].mxu0  ;;  %2104 = vmatprep.subr.bf16.mxu1 %v4393_v33 }
 0x366   : > { %v876_v43 = vadd.f32 %v875_v41, %v5076_v51  ;;  %v877_v49 = vpop.f32.mrb[30].mxu0  ;;  %1429 = vmatprep.mubr.bf16.mxu1 %v1025_v37  ;;  %1542 = vmatprep.mubr.bf16.mxu0 %v1025_v37  ;;  %v4414_v37 = vld [vmem:[#allocation7 + $0x134] ss:$8 sps:$4 sm:$0xff]  }
 0x367   : > { %v878_v44 = vadd.f32 %v877_v49, %v5073_v50  ;;  %v879_v47 = vpop.f32.mrb[31].mxu0  ;;  %1430 = vmatmul.mubr.bf16.gmra.mrb[24].mxu1 %v1024_v36  ;;  %1543 = vmatmul.mubr.bf16.gmra.mrb[56].mxu0 %v1024_v36  ;;  %v934_v54 = vmax.f32 %v874_v40, 0.0 }
 0x368   : > { %v880_v52 = vadd.f32 %v879_v47, %v5076_v51  ;;  %2105 = vmatpush1.bf16.msra.mxu1 %v4391_v39  ;;  %v935_v57 = vmax.f32 %v876_v43, 0.0  ;;  %v4412_v43 = vld [vmem:[#allocation7 + $0x130] ss:$8 sps:$4 sm:$0xff]   ;;  %v4417_v47 = vld [vmem:[#allocation7 + $0x144] ss:$8 sps:$4 sm:$0xff]  }
 0x369   : > { %v936_v55 = vmax.f32 %v878_v44, 0.0  ;;  %2106 = vmatprep.subr.bf16.mxu1 %v4396_v42 }
 0x36a   : > { %v937_v58 = vmax.f32 %v880_v52, 0.0 }
 0x36b   : > { %v1026_v59 = vpack.c.bf16 %v936_v55, %v934_v54 }
 0x36c   : > { %v1027_v60 = vpack.c.bf16 %v937_v58, %v935_v57  ;;  %v883_v61 = vpop.f32.mrb[32].mxu0  ;;  %2107 = vmatpush1.bf16.msra.mxu1 %v4394_v53  ;;  %v4415_v57 = vld [vmem:[#allocation7 + $0x140] ss:$8 sps:$4 sm:$0xff]  }
 0x36d   : > { %v884_v63 = vadd.f32 %v883_v61, %v5073_v50  ;;  %v885_v0 = vpop.f32.mrb[33].mxu0  ;;  %2108 = vmatprep.subr.bf16.mxu1 %v4399_v56 }
 0x36e   : > { %v886_v2 = vadd.f32 %v885_v0, %v5076_v51  ;;  %v887_v3 = vpop.f32.mrb[34].mxu0  ;;  %1439 = vmatprep.mubr.bf16.mxu1 %v1027_v60  ;;  %1552 = vmatprep.mubr.bf16.mxu0 %v1027_v60  ;;  %v4420_v60 = vld [vmem:[#allocation7 + $0x154] ss:$8 sps:$4 sm:$0xff]  }
 0x36f   : > { %v888_v4 = vadd.f32 %v887_v3, %v5073_v50  ;;  %v889_v5 = vpop.f32.mrb[35].mxu0  ;;  %1440 = vmatmul.mubr.bf16.gmra.mrb[28].mxu1 %v1026_v59  ;;  %1553 = vmatmul.mubr.bf16.gmra.mrb[60].mxu0 %v1026_v59  ;;  %v938_v8 = vmax.f32 %v884_v63, 0.0 }
 0x370   : > { %v890_v6 = vadd.f32 %v889_v5, %v5076_v51  ;;  %2109 = vmatpush1.bf16.msra.mxu1 %v4397_v62  ;;  %v939_v11 = vmax.f32 %v886_v2, 0.0  ;;  %v4418_v2 = vld [vmem:[#allocation7 + $0x150] ss:$8 sps:$4 sm:$0xff]  }
 0x371   : > { %v940_v9 = vmax.f32 %v888_v4, 0.0  ;;  %2110 = vmatprep.subr.bf16.mxu1 %v4402_v1 }
 0x372   : > { %v941_v12 = vmax.f32 %v890_v6, 0.0 }
 0x373   : > { %v1028_v13 = vpack.c.bf16 %v940_v9, %v938_v8  ;;  %v4421_v9 = vld [vmem:[#allocation7 + $0x160] ss:$8 sps:$4 sm:$0xff]  }
 0x374   : > { %v1029_v14 = vpack.c.bf16 %v941_v12, %v939_v11  ;;  %v893_v16 = vpop.f32.mrb[36].mxu0  ;;  %2111 = vmatpush1.bf16.msra.mxu1 %v4400_v7  ;;  %v4429_v11 = vld [vmem:[#allocation7 + $0x184] ss:$8 sps:$4 sm:$0xff]   ;;  %v1047_v12 = vsub.s32 2, %v5064_v45 }
 0x375   : > { %v894_v18 = vadd.f32 %v893_v16, %v5073_v50  ;;  %v895_v19 = vpop.f32.mrb[37].mxu0  ;;  %2112 = vmatprep.subr.bf16.mxu1 %v4405_v10  ;;  %v4426_v10 = vld [vmem:[#allocation7 + $0x174] ss:$8 sps:$4 sm:$0xff]  }
 0x376   : > { %v896_v21 = vadd.f32 %v895_v19, %v5076_v51  ;;  %v897_v22 = vpop.f32.mrb[38].mxu0  ;;  %1449 = vmatprep.mubr.bf16.mxu1 %v1029_v14  ;;  %1562 = vmatprep.mubr.bf16.mxu0 %v1029_v14  ;;  %v1051_v14 = vsub.s32 3, %v5064_v45 }
 0x377   : > { %v898_v23 = vadd.f32 %v897_v22, %v5073_v50  ;;  %v899_v24 = vpop.f32.mrb[39].mxu0  ;;  %1450 = vmatmul.mubr.bf16.gmra.mrb[32].mxu1 %v1028_v13  ;;  %1563 = vmatmul.mubr.bf16.gmra.mrb[64].mxu0 %v1028_v13  ;;  %v942_v15 = vmax.f32 %v894_v18, 0.0  ;;  %v1019_v13 = vld [vmem:[#allocation10 + $0x3] ss:$8 sm:$0xf] }
 0x378   : > { %v900_v25 = vadd.f32 %v899_v24, %v5076_v51  ;;  %2113 = vmatpush1.bf16.msra.mxu1 %v4403_v17  ;;  %v943_v29 = vmax.f32 %v896_v21, 0.0  ;;  %v5113_v16 = vrot.slane %v1019_v13, %v5067_v46  ;;  %v5115_v17 = vrot.slane %v1019_v13, %v1047_v12 }
 0x379   : > { %v944_v27 = vmax.f32 %v898_v23, 0.0  ;;  %2114 = vmatprep.subr.bf16.mxu1 %v4408_v20  ;;  %v5118_v18 = vrot.slane %v1019_v13, %v5070_v48  ;;  %v5120_v19 = vrot.slane %v1019_v13, %v1051_v14 }
 0x37a   : > { %v945_v30 = vmax.f32 %v900_v25, 0.0 }
 0x37b   : > { %v1030_v31 = vpack.c.bf16 %v944_v27, %v942_v15 }
 0x37c   : > { %v1031_v32 = vpack.c.bf16 %v945_v30, %v943_v29  ;;  %v903_v33 = vpop.f32.mrb[40].mxu0  ;;  %2115 = vmatpush1.bf16.msra.mxu1 %v4406_v26 }
 0x37d   : > { %v904_v35 = vadd.f32 %v903_v33, %v5073_v50  ;;  %v905_v36 = vpop.f32.mrb[41].mxu0  ;;  %2116 = vmatprep.subr.bf16.mxu1 %v4411_v28  ;;  %v4476_v33 = vld [vmem:[#allocation5 + $0x80] sm:$0xff]  }
 0x37e   : > { %v906_v38 = vadd.f32 %v905_v36, %v5076_v51  ;;  %v907_v39 = vpop.f32.mrb[42].mxu0  ;;  %1459 = vmatprep.mubr.bf16.mxu1 %v1031_v32  ;;  %1572 = vmatprep.mubr.bf16.mxu0 %v1031_v32  ;;  %v4475_v32 = vld [vmem:[#allocation5 + $0xc0] sm:$0xff]   ;;  %v4477_v36 = vld [vmem:[#allocation5 + $0xc8] sm:$0xff]  }
 0x37f   : > { %v908_v40 = vadd.f32 %v907_v39, %v5073_v50  ;;  %v909_v41 = vpop.f32.mrb[43].mxu0  ;;  %1460 = vmatmul.mubr.bf16.gmra.mrb[36].mxu1 %v1030_v31  ;;  %1573 = vmatmul.mubr.bf16.gmra.mrb[68].mxu0 %v1030_v31  ;;  %v946_v49 = vmax.f32 %v904_v35, 0.0 }
 0x380   : > { %v910_v42 = vadd.f32 %v909_v41, %v5076_v51  ;;  %2117 = vmatpush1.bf16.msra.mxu1 %v4409_v34  ;;  %v947_v52 = vmax.f32 %v906_v38, 0.0  ;;  %3745 = vmatprep.subr.bf16.mxu0 %v4475_v32 }
 0x381   : > { %v948_v44 = vmax.f32 %v908_v40, 0.0  ;;  %2118 = vmatprep.subr.bf16.mxu1 %v4414_v37  ;;  %3746 = vmatpush3.bf16.msra.mxu0 %v4476_v33 }
 0x382   : > { %v949_v53 = vmax.f32 %v910_v42, 0.0  ;;  %3747 = vmatprep.subr.bf16.mxu0 %v4477_v36  ;;  %v4438_v36 = vld [vmem:[#allocation7 + $0x1b4] ss:$8 sps:$4 sm:$0xff]  }
 0x383   : > { %v1032_v54 = vpack.c.bf16 %v948_v44, %v946_v49  ;;  %v4478_v44 = vld [vmem:[#allocation5 + $0x88] sm:$0xff]  }
 0x384   : > { %v1033_v55 = vpack.c.bf16 %v949_v53, %v947_v52  ;;  %v913_v56 = vpop.f32.mrb[44].mxu0  ;;  %2119 = vmatpush1.bf16.msra.mxu1 %v4412_v43  ;;  %v4479_v53 = vld [vmem:[#allocation5 + $0xd0] sm:$0xff]  }
 0x385   : > { %v914_v58 = vadd.f32 %v913_v56, %v5073_v50  ;;  %v915_v59 = vpop.f32.mrb[45].mxu0  ;;  %2120 = vmatprep.subr.bf16.mxu1 %v4417_v47  ;;  %3748 = vmatpush3.bf16.msra.mxu0 %v4478_v44 }
 0x386   : > { %v916_v61 = vadd.f32 %v915_v59, %v5076_v51  ;;  %v917_v62 = vpop.f32.mrb[46].mxu0  ;;  %1469 = vmatprep.mubr.bf16.mxu1 %v1033_v55  ;;  %1582 = vmatprep.mubr.bf16.mxu0 %v1033_v55 }
 0x387   : > { %v918_v63 = vadd.f32 %v917_v62, %v5073_v50  ;;  %v919_v0 = vpop.f32.mrb[47].mxu0  ;;  %1470 = vmatmul.mubr.bf16.gmra.mrb[40].mxu1 %v1032_v54  ;;  %1583 = vmatmul.mubr.bf16.gmra.mrb[72].mxu0 %v1032_v54  ;;  %v950_v3 = vmax.f32 %v914_v58, 0.0  ;;  %v4423_v50 = vld [vmem:[#allocation7 + $0x164] ss:$8 sps:$4 sm:$0xff]   ;;  %v4427_v58 = vld [vmem:[#allocation7 + $0x180] ss:$8 sps:$4 sm:$0xff]  }
 0x388   : > { %v920_v1 = vadd.f32 %v919_v0, %v5076_v51  ;;  %2121 = vmatpush1.bf16.msra.mxu1 %v4415_v57  ;;  %v951_v5 = vmax.f32 %v916_v61, 0.0  ;;  %v4424_v51 = vld [vmem:[#allocation7 + $0x170] ss:$8 sps:$4 sm:$0xff]   ;;  %3749 = vmatprep.subr.bf16.mxu0 %v4479_v53 }
 0x389   : > { %v952_v4 = vmax.f32 %v918_v63, 0.0  ;;  %2122 = vmatprep.subr.bf16.mxu1 %v4420_v60  ;;  %v4432_v63 = vld [vmem:[#allocation7 + $0x194] ss:$8 sps:$4 sm:$0xff]  }
 0x38a   : > { %v953_v6 = vmax.f32 %v920_v1, 0.0 }
 0x38b   : > { %v1034_v7 = vpack.c.bf16 %v952_v4, %v950_v3  ;;  %v4480_v4 = vld [vmem:[#allocation5 + $0x90] sm:$0xff]  }
 0x38c   : > { %v1035_v8 = vpack.c.bf16 %v953_v6, %v951_v5  ;;  %2123 = vmatpush1.bf16.msra.mxu1 %v4418_v2  ;;  %3750 = vmatpush3.bf16.msra.mxu0 %v4480_v4 }
 0x38d   : > { %2124 = vmatprep.subr.bf16.mxu1 %v4423_v50  ;;  %v4481_v50 = vld [vmem:[#allocation5 + $0xd8] sm:$0xff]  }
 0x38e   : > { %1479 = vmatprep.mubr.bf16.mxu1 %v1035_v8  ;;  %1592 = vmatprep.mubr.bf16.mxu0 %v1035_v8 }
 0x38f   : > { %1480 = vmatmul.mubr.bf16.gmra.mrb[44].mxu1 %v1034_v7  ;;  %1593 = vmatmul.mubr.bf16.gmra.mrb[76].mxu0 %v1034_v7 }
 0x390   : > { %2125 = vmatpush1.bf16.msra.mxu1 %v4421_v9  ;;  %3751 = vmatprep.subr.bf16.mxu0 %v4481_v50 }
 0x391   : > { %2126 = vmatprep.subr.bf16.mxu1 %v4426_v10 }
 0x394   : > { %2127 = vmatpush1.bf16.msra.mxu1 %v4424_v51  ;;  %v4430_v51 = vld [vmem:[#allocation7 + $0x190] ss:$8 sps:$4 sm:$0xff]  }
 0x395   : > { %2209 = vmatprep.subr.bf16.mxu1 %v4429_v11 }
 0x42a   : > { %v1411_v20 = vpop.f32.mrb[16].mxu1  ;;  %v1524_v21 = vpop.f32.mrb[48].mxu0 }
 0x42b   : > { %v1412_v22 = vadd.f32 %v1411_v20, %v5113_v16  ;;  %v1525_v23 = vadd.f32 %v1524_v21, %v5115_v17  ;;  %v1413_v24 = vpop.f32.mrb[17].mxu1  ;;  %v1526_v25 = vpop.f32.mrb[49].mxu0  ;;  %v4435_v20 = vld [vmem:[#allocation7 + $0x1a4] ss:$8 sps:$4 sm:$0xff]  }
 0x42c   : > { %v1414_v45 = vadd.f32 %v1413_v24, %v5118_v18  ;;  %v1527_v26 = vadd.f32 %v1526_v25, %v5120_v19  ;;  %v1415_v15 = vpop.f32.mrb[18].mxu1  ;;  %v1528_v27 = vpop.f32.mrb[50].mxu0  ;;  %v4482_v25 = vld [vmem:[#allocation5 + $0x98] sm:$0xff]  }
 0x42d   : > { %v1416_v28 = vadd.f32 %v1415_v15, %v5113_v16  ;;  %v1529_v29 = vadd.f32 %v1528_v27, %v5115_v17  ;;  %v1417_v30 = vpop.f32.mrb[19].mxu1  ;;  %v1530_v31 = vpop.f32.mrb[51].mxu0  ;;  %v1603_v37 = vmax.f32 %v1412_v22, 0.0  ;;  %v1605_v38 = vmax.f32 %v1525_v23, 0.0  ;;  %v4483_v15 = vld [vmem:[#allocation5 + $0xe0] sm:$0xff]   ;;  %3752 = vmatpush3.bf16.msra.mxu0 %v4482_v25 }
 0x42e   : > { %v1418_v34 = vadd.f32 %v1417_v30, %v5118_v18  ;;  %v1531_v35 = vadd.f32 %v1530_v31, %v5120_v19  ;;  %v1604_v41 = vmax.f32 %v1414_v45, 0.0  ;;  %v1606_v42 = vmax.f32 %v1527_v26, 0.0  ;;  %v4433_v31 = vld [vmem:[#allocation7 + $0x1a0] ss:$8 sps:$4 sm:$0xff]   ;;  %3753 = vmatprep.subr.bf16.mxu0 %v4483_v15 }
 0x42f   : > { %v1607_v39 = vmax.f32 %v1416_v28, 0.0  ;;  %v1609_v40 = vmax.f32 %v1529_v29, 0.0 }
 0x430   : > { %v1608_v43 = vmax.f32 %v1418_v34, 0.0  ;;  %v1610_v49 = vmax.f32 %v1531_v35, 0.0 }
 0x431   : > { %v1733_v47 = vpack.c.bf16 %v1607_v39, %v1603_v37  ;;  %v5130_v52 = vpack.c.bf16 %v1609_v40, %v1605_v38 }
 0x432   : > { %v1734_v54 = vpack.c.bf16 %v1608_v43, %v1604_v41  ;;  %v5132_v55 = vpack.c.bf16 %v1610_v49, %v1606_v42  ;;  %v1421_v56 = vpop.f32.mrb[20].mxu1  ;;  %v1534_v57 = vpop.f32.mrb[52].mxu0  ;;  %v4484_v41 = vld [vmem:[#allocation5 + $0xa0] sm:$0xff]  }
 0x433   : > { %v1422_v59 = vadd.f32 %v1421_v56, %v5113_v16  ;;  %v1535_v60 = vadd.f32 %v1534_v57, %v5115_v17  ;;  %v1423_v61 = vpop.f32.mrb[21].mxu1  ;;  %v1536_v62 = vpop.f32.mrb[53].mxu0  ;;  %v4436_v56 = vld [vmem:[#allocation7 + $0x1b0] ss:$8 sps:$4 sm:$0xff]   ;;  %3754 = vmatpush3.bf16.msra.mxu0 %v4484_v41 }
 0x434   : > { %v1424_v0 = vadd.f32 %v1423_v61, %v5118_v18  ;;  %v1537_v1 = vadd.f32 %v1536_v62, %v5120_v19  ;;  %v1425_v2 = vpop.f32.mrb[22].mxu1  ;;  %v1538_v3 = vpop.f32.mrb[54].mxu0  ;;  %2128 = vmatprep.mubr.bf16.mxu1 %v1734_v54  ;;  %v4441_v61 = vld [vmem:[#allocation7 + $0x1c4] ss:$8 sps:$4 sm:$0xff]  }
 0x435   : > { %v1426_v5 = vadd.f32 %v1425_v2, %v5113_v16  ;;  %v1539_v6 = vadd.f32 %v1538_v3, %v5115_v17  ;;  %v1427_v7 = vpop.f32.mrb[23].mxu1  ;;  %v1540_v8 = vpop.f32.mrb[55].mxu0  ;;  %2129 = vmatmul.mubr.bf16.vlgmr.msra.gmra.mrb[48].mxu1 %v1733_v47  ;;  %v1611_v11 = vmax.f32 %v1422_v59, 0.0  ;;  %v1613_v12 = vmax.f32 %v1535_v60, 0.0  ;;  %v4485_v47 = vld [vmem:[#allocation5 + $0xe8] sm:$0xff]  }
 0x436   : > { %v1428_v9 = vadd.f32 %v1427_v7, %v5118_v18  ;;  %v1541_v10 = vadd.f32 %v1540_v8, %v5120_v19  ;;  %2210 = vmatpush1.bf16.msra.mxu1 %v4427_v58  ;;  %v1612_v21 = vmax.f32 %v1424_v0, 0.0  ;;  %v1614_v22 = vmax.f32 %v1537_v1, 0.0  ;;  %v4486_v2 = vld [vmem:[#allocation5 + $0xa8] sm:$0xff]   ;;  %3755 = vmatprep.subr.bf16.mxu0 %v4485_v47 }
 0x437   : > { %v1615_v13 = vmax.f32 %v1426_v5, 0.0  ;;  %v1617_v14 = vmax.f32 %v1539_v6, 0.0  ;;  %2211 = vmatprep.subr.bf16.mxu1 %v4432_v63  ;;  %v4487_v5 = vld [vmem:[#allocation5 + $0xf0] sm:$0xff]   ;;  %3756 = vmatpush3.bf16.msra.mxu0 %v4486_v2  ;;  %v4445_v47 = vld [vmem:[#allocation7 + $0x1e0] ss:$8 sps:$4 sm:$0xff]  }
 0x438   : > { %v1616_v23 = vmax.f32 %v1428_v9, 0.0  ;;  %v1618_v24 = vmax.f32 %v1541_v10, 0.0  ;;  %v4439_v9 = vld [vmem:[#allocation7 + $0x1c0] ss:$8 sps:$4 sm:$0xff]   ;;  %3757 = vmatprep.subr.bf16.mxu0 %v4487_v5 }
 0x439   : > { %v1737_v45 = vpack.c.bf16 %v1615_v13, %v1611_v11  ;;  %v5142_v26 = vpack.c.bf16 %v1617_v14, %v1613_v12  ;;  %v4444_v13 = vld [vmem:[#allocation7 + $0x1d4] ss:$8 sps:$4 sm:$0xff]  }
 0x43a   : > { %v1738_v27 = vpack.c.bf16 %v1616_v23, %v1612_v21  ;;  %v5144_v28 = vpack.c.bf16 %v1618_v24, %v1614_v22  ;;  %2212 = vmatpush1.bf16.msra.mxu1 %v4430_v51  ;;  %v1431_v29 = vpop.f32.mrb[24].mxu1  ;;  %v1544_v30 = vpop.f32.mrb[56].mxu0  ;;  %v4488_v23 = vld [vmem:[#allocation5 + $0xb0] sm:$0xff]  }
 0x43b   : > { %v1432_v32 = vadd.f32 %v1431_v29, %v5113_v16  ;;  %v1545_v33 = vadd.f32 %v1544_v30, %v5115_v17  ;;  %v1433_v34 = vpop.f32.mrb[25].mxu1  ;;  %v1546_v35 = vpop.f32.mrb[57].mxu0  ;;  %2213 = vmatprep.subr.bf16.mxu1 %v4435_v20  ;;  %v4442_v30 = vld [vmem:[#allocation7 + $0x1d0] ss:$8 sps:$4 sm:$0xff]   ;;  %3758 = vmatpush3.bf16.msra.mxu0 %v4488_v23 }
 0x43c   : > { %v1434_v37 = vadd.f32 %v1433_v34, %v5118_v18  ;;  %v1547_v38 = vadd.f32 %v1546_v35, %v5120_v19  ;;  %v1435_v39 = vpop.f32.mrb[26].mxu1  ;;  %v1548_v40 = vpop.f32.mrb[58].mxu0  ;;  %2138 = vmatprep.mubr.bf16.mxu1 %v1738_v27  ;;  %v4447_v35 = vld [vmem:[#allocation7 + $0x1e4] ss:$8 sps:$4 sm:$0xff]  }
 0x43d   : > { %v1436_v42 = vadd.f32 %v1435_v39, %v5113_v16  ;;  %v1549_v43 = vadd.f32 %v1548_v40, %v5115_v17  ;;  %v1437_v49 = vpop.f32.mrb[27].mxu1  ;;  %v1550_v44 = vpop.f32.mrb[59].mxu0  ;;  %2139 = vmatmul.mubr.bf16.gmra.mrb[52].mxu1 %v1737_v45  ;;  %v1619_v57 = vmax.f32 %v1432_v32, 0.0  ;;  %v1621_v58 = vmax.f32 %v1545_v33, 0.0 }
 0x43e   : > { %v1438_v53 = vadd.f32 %v1437_v49, %v5118_v18  ;;  %v1551_v54 = vadd.f32 %v1550_v44, %v5120_v19  ;;  %2214 = vmatpush1.bf16.msra.mxu1 %v4433_v31  ;;  %v1620_v62 = vmax.f32 %v1434_v37, 0.0  ;;  %v1622_v63 = vmax.f32 %v1547_v38, 0.0 }
 0x43f   : > { %v1623_v59 = vmax.f32 %v1436_v42, 0.0  ;;  %v1625_v60 = vmax.f32 %v1549_v43, 0.0  ;;  %2215 = vmatprep.subr.bf16.mxu1 %v4438_v36 }
 0x440   : > { %v1624_v0 = vmax.f32 %v1438_v53, 0.0  ;;  %v1626_v1 = vmax.f32 %v1551_v54, 0.0 }
 0x441   : > { %v1741_v3 = vpack.c.bf16 %v1623_v59, %v1619_v57  ;;  %v5154_v4 = vpack.c.bf16 %v1625_v60, %v1621_v58  ;;  %v4450_v58 = vld [vmem:[#allocation7 + $0x1f4] ss:$8 sps:$4 sm:$0xff]  }
 0x442   : > { %v1742_v6 = vpack.c.bf16 %v1624_v0, %v1620_v62  ;;  %v5156_v7 = vpack.c.bf16 %v1626_v1, %v1622_v63  ;;  %2216 = vmatpush1.bf16.msra.mxu1 %v4436_v56  ;;  %v1441_v8 = vpop.f32.mrb[28].mxu1  ;;  %v1554_v50 = vpop.f32.mrb[60].mxu0 }
 0x443   : > { %v1442_v10 = vadd.f32 %v1441_v8, %v5113_v16  ;;  %v1555_v51 = vadd.f32 %v1554_v50, %v5115_v17  ;;  %v1443_v11 = vpop.f32.mrb[29].mxu1  ;;  %v1556_v12 = vpop.f32.mrb[61].mxu0  ;;  %2217 = vmatprep.subr.bf16.mxu1 %v4441_v61 }
 0x444   : > { %v1444_v14 = vadd.f32 %v1443_v11, %v5118_v18  ;;  %v1557_v20 = vadd.f32 %v1556_v12, %v5120_v19  ;;  %v1445_v21 = vpop.f32.mrb[30].mxu1  ;;  %v1558_v22 = vpop.f32.mrb[62].mxu0  ;;  %2148 = vmatprep.mubr.bf16.mxu1 %v1742_v6  ;;  %v4448_v6 = vld [vmem:[#allocation7 + $0x1f0] ss:$8 sps:$4 sm:$0xff]  }
 0x445   : > { %v1446_v24 = vadd.f32 %v1445_v21, %v5113_v16  ;;  %v1559_v25 = vadd.f32 %v1558_v22, %v5115_v17  ;;  %v1447_v45 = vpop.f32.mrb[31].mxu1  ;;  %v1560_v15 = vpop.f32.mrb[63].mxu0  ;;  %2149 = vmatmul.mubr.bf16.gmra.mrb[56].mxu1 %v1741_v3  ;;  %v1627_v31 = vmax.f32 %v1442_v10, 0.0  ;;  %v1629_v32 = vmax.f32 %v1555_v51, 0.0  ;;  %v4453_v51 = vld [vmem:[#allocation7 + $0x204] ss:$8 sps:$4 sm:$0xff]  }
 0x446   : > { %v1448_v27 = vadd.f32 %v1447_v45, %v5118_v18  ;;  %v1561_v29 = vadd.f32 %v1560_v15, %v5120_v19  ;;  %2218 = vmatpush1.bf16.msra.mxu1 %v4439_v9  ;;  %v1628_v36 = vmax.f32 %v1444_v14, 0.0  ;;  %v1630_v37 = vmax.f32 %v1557_v20, 0.0  ;;  %v4451_v45 = vld [vmem:[#allocation7 + $0x200] ss:$8 sps:$4 sm:$0xff]  }
 0x447   : > { %v1631_v33 = vmax.f32 %v1446_v24, 0.0  ;;  %v1633_v34 = vmax.f32 %v1559_v25, 0.0  ;;  %2219 = vmatprep.subr.bf16.mxu1 %v4444_v13 }
 0x448   : > { %v1632_v38 = vmax.f32 %v1448_v27, 0.0  ;;  %v1634_v39 = vmax.f32 %v1561_v29, 0.0 }
 0x449   : > { %v1745_v40 = vpack.c.bf16 %v1631_v33, %v1627_v31  ;;  %v5166_v41 = vpack.c.bf16 %v1633_v34, %v1629_v32  ;;  %v4456_v31 = vld [vmem:[#allocation7 + $0x214] ss:$8 sps:$4 sm:$0xff]  }
 0x44a   : > { %v1746_v42 = vpack.c.bf16 %v1632_v38, %v1628_v36  ;;  %v5168_v43 = vpack.c.bf16 %v1634_v39, %v1630_v37  ;;  %2220 = vmatpush1.bf16.msra.mxu1 %v4442_v30  ;;  %v1451_v49 = vpop.f32.mrb[32].mxu1  ;;  %v1564_v44 = vpop.f32.mrb[64].mxu0 }
 0x44b   : > { %v1452_v53 = vadd.f32 %v1451_v49, %v5113_v16  ;;  %v1565_v54 = vadd.f32 %v1564_v44, %v5115_v17  ;;  %v1453_v56 = vpop.f32.mrb[33].mxu1  ;;  %v1566_v57 = vpop.f32.mrb[65].mxu0  ;;  %2221 = vmatprep.subr.bf16.mxu1 %v4447_v35  ;;  %v4454_v49 = vld [vmem:[#allocation7 + $0x210] ss:$8 sps:$4 sm:$0xff]  }
 0x44c   : > { %v1454_v59 = vadd.f32 %v1453_v56, %v5118_v18  ;;  %v1567_v60 = vadd.f32 %v1566_v57, %v5120_v19  ;;  %v1455_v61 = vpop.f32.mrb[34].mxu1  ;;  %v1568_v62 = vpop.f32.mrb[66].mxu0  ;;  %2158 = vmatprep.mubr.bf16.mxu1 %v1746_v42  ;;  %v4459_v56 = vld [vmem:[#allocation7 + $0x224] ss:$8 sps:$4 sm:$0xff]  }
 0x44d   : > { %v1456_v63 = vadd.f32 %v1455_v61, %v5113_v16  ;;  %v1569_v0 = vadd.f32 %v1568_v62, %v5115_v17  ;;  %v1457_v1 = vpop.f32.mrb[35].mxu1  ;;  %v1570_v2 = vpop.f32.mrb[67].mxu0  ;;  %2159 = vmatmul.mubr.bf16.gmra.mrb[60].mxu1 %v1745_v40  ;;  %v1635_v8 = vmax.f32 %v1452_v53, 0.0  ;;  %v1637_v50 = vmax.f32 %v1565_v54, 0.0 }
 0x44e   : > { %v1458_v3 = vadd.f32 %v1457_v1, %v5118_v18  ;;  %v1571_v5 = vadd.f32 %v1570_v2, %v5120_v19  ;;  %2222 = vmatpush1.bf16.msra.mxu1 %v4445_v47  ;;  %v1636_v11 = vmax.f32 %v1454_v59, 0.0  ;;  %v1638_v12 = vmax.f32 %v1567_v60, 0.0 }
 0x44f   : > { %v1639_v9 = vmax.f32 %v1456_v63, 0.0  ;;  %v1641_v10 = vmax.f32 %v1569_v0, 0.0  ;;  %2223 = vmatprep.subr.bf16.mxu1 %v4450_v58 }
 0x450   : > { %v1640_v13 = vmax.f32 %v1458_v3, 0.0  ;;  %v1642_v14 = vmax.f32 %v1571_v5, 0.0  ;;  %v4457_v3 = vld [vmem:[#allocation7 + $0x220] ss:$8 sps:$4 sm:$0xff]  }
 0x451   : > { %v1749_v20 = vpack.c.bf16 %v1639_v9, %v1635_v8  ;;  %v5178_v21 = vpack.c.bf16 %v1641_v10, %v1637_v50  ;;  %v4462_v9 = vld [vmem:[#allocation7 + $0x234] ss:$8 sps:$4 sm:$0xff]  }
 0x452   : > { %v1750_v22 = vpack.c.bf16 %v1640_v13, %v1636_v11  ;;  %v5180_v23 = vpack.c.bf16 %v1642_v14, %v1638_v12  ;;  %2224 = vmatpush1.bf16.msra.mxu1 %v4448_v6  ;;  %v1461_v24 = vpop.f32.mrb[36].mxu1  ;;  %v1574_v25 = vpop.f32.mrb[68].mxu0 }
 0x453   : > { %v1462_v15 = vadd.f32 %v1461_v24, %v5113_v16  ;;  %v1575_v27 = vadd.f32 %v1574_v25, %v5115_v17  ;;  %v1463_v29 = vpop.f32.mrb[37].mxu1  ;;  %v1576_v30 = vpop.f32.mrb[69].mxu0  ;;  %2225 = vmatprep.subr.bf16.mxu1 %v4453_v51 }
 0x454   : > { %v1464_v32 = vadd.f32 %v1463_v29, %v5118_v18  ;;  %v1577_v33 = vadd.f32 %v1576_v30, %v5120_v19  ;;  %v1465_v34 = vpop.f32.mrb[38].mxu1  ;;  %v1578_v35 = vpop.f32.mrb[70].mxu0  ;;  %2168 = vmatprep.mubr.bf16.mxu1 %v1750_v22 }
 0x455   : > { %v1466_v36 = vadd.f32 %v1465_v34, %v5113_v16  ;;  %v1579_v37 = vadd.f32 %v1578_v35, %v5115_v17  ;;  %v1467_v38 = vpop.f32.mrb[39].mxu1  ;;  %v1580_v39 = vpop.f32.mrb[71].mxu0  ;;  %2169 = vmatmul.mubr.bf16.gmra.mrb[64].mxu1 %v1749_v20  ;;  %v1643_v44 = vmax.f32 %v1462_v15, 0.0  ;;  %v1645_v47 = vmax.f32 %v1575_v27, 0.0 }
 0x456   : > { %v1468_v40 = vadd.f32 %v1467_v38, %v5118_v18  ;;  %v1581_v42 = vadd.f32 %v1580_v39, %v5120_v19  ;;  %2226 = vmatpush1.bf16.msra.mxu1 %v4451_v45  ;;  %v1644_v57 = vmax.f32 %v1464_v32, 0.0  ;;  %v1646_v58 = vmax.f32 %v1577_v33, 0.0  ;;  %v4460_v45 = vld [vmem:[#allocation7 + $0x230] ss:$8 sps:$4 sm:$0xff]  }
 0x457   : > { %v1647_v53 = vmax.f32 %v1466_v36, 0.0  ;;  %v1649_v54 = vmax.f32 %v1579_v37, 0.0  ;;  %2227 = vmatprep.subr.bf16.mxu1 %v4456_v31  ;;  %v4465_v31 = vld [vmem:[#allocation7 + $0x244] ss:$8 sps:$4 sm:$0xff]  }
 0x458   : > { %v1648_v59 = vmax.f32 %v1468_v40, 0.0  ;;  %v1650_v60 = vmax.f32 %v1581_v42, 0.0 }
 0x459   : > { %v1753_v61 = vpack.c.bf16 %v1647_v53, %v1643_v44  ;;  %v5190_v62 = vpack.c.bf16 %v1649_v54, %v1645_v47 }
 0x45a   : > { %v1754_v63 = vpack.c.bf16 %v1648_v59, %v1644_v57  ;;  %v5192_v0 = vpack.c.bf16 %v1650_v60, %v1646_v58  ;;  %2228 = vmatpush1.bf16.msra.mxu1 %v4454_v49  ;;  %v1471_v1 = vpop.f32.mrb[40].mxu1  ;;  %v1584_v2 = vpop.f32.mrb[72].mxu0  ;;  %v4463_v49 = vld [vmem:[#allocation7 + $0x240] ss:$8 sps:$4 sm:$0xff]  }
 0x45b   : > { %v1472_v5 = vadd.f32 %v1471_v1, %v5113_v16  ;;  %v1585_v6 = vadd.f32 %v1584_v2, %v5115_v17  ;;  %v1473_v8 = vpop.f32.mrb[41].mxu1  ;;  %v1586_v50 = vpop.f32.mrb[73].mxu0  ;;  %2229 = vmatprep.subr.bf16.mxu1 %v4459_v56  ;;  %v4468_v56 = vld [vmem:[#allocation7 + $0x254] ss:$8 sps:$4 sm:$0xff]  }
 0x45c   : > { %v1474_v10 = vadd.f32 %v1473_v8, %v5118_v18  ;;  %v1587_v51 = vadd.f32 %v1586_v50, %v5120_v19  ;;  %v1475_v11 = vpop.f32.mrb[42].mxu1  ;;  %v1588_v12 = vpop.f32.mrb[74].mxu0  ;;  %2178 = vmatprep.mubr.bf16.mxu1 %v1754_v63 }
 0x45d   : > { %v1476_v13 = vadd.f32 %v1475_v11, %v5113_v16  ;;  %v1589_v14 = vadd.f32 %v1588_v12, %v5115_v17  ;;  %v1477_v20 = vpop.f32.mrb[43].mxu1  ;;  %v1590_v22 = vpop.f32.mrb[75].mxu0  ;;  %2179 = vmatmul.mubr.bf16.gmra.mrb[68].mxu1 %v1753_v61  ;;  %v1651_v15 = vmax.f32 %v1472_v5, 0.0  ;;  %v1653_v27 = vmax.f32 %v1585_v6, 0.0  ;;  %v4466_v6 = vld [vmem:[#allocation7 + $0x250] ss:$8 sps:$4 sm:$0xff]  }
 0x45e   : > { %v1478_v24 = vadd.f32 %v1477_v20, %v5118_v18  ;;  %v1591_v25 = vadd.f32 %v1590_v22, %v5120_v19  ;;  %2230 = vmatpush1.bf16.msra.mxu1 %v4457_v3  ;;  %v1652_v32 = vmax.f32 %v1474_v10, 0.0  ;;  %v1654_v33 = vmax.f32 %v1587_v51, 0.0  ;;  %v4471_v51 = vld [vmem:[#allocation7 + $0x264] ss:$8 sps:$4 sm:$0xff]  }
 0x45f   : > { %v1655_v29 = vmax.f32 %v1476_v13, 0.0  ;;  %v1657_v30 = vmax.f32 %v1589_v14, 0.0  ;;  %2231 = vmatprep.subr.bf16.mxu1 %v4462_v9 }
 0x460   : > { %v1656_v34 = vmax.f32 %v1478_v24, 0.0  ;;  %v1658_v35 = vmax.f32 %v1591_v25, 0.0  ;;  %v4472_v24 = vld [vmem:[#allocation7 + $0x270] ss:$8 sps:$4 sm:$0xff]  }
 0x461   : > { %v1757_v36 = vpack.c.bf16 %v1655_v29, %v1651_v15  ;;  %v5202_v37 = vpack.c.bf16 %v1657_v30, %v1653_v27 }
 0x462   : > { %v1758_v38 = vpack.c.bf16 %v1656_v34, %v1652_v32  ;;  %v1760_v39 = vpack.c.bf16 %v1658_v35, %v1654_v33  ;;  %2232 = vmatpush1.bf16.msra.mxu1 %v4460_v45  ;;  %v1481_v40 = vpop.f32.mrb[44].mxu1  ;;  %v1594_v42 = vpop.f32.mrb[76].mxu0  ;;  %v4492_v34 = vld [vmem:[#allocation5 + $0x108] sm:$0xff]  }
 0x463   : > { %v1482_v44 = vadd.f32 %v1481_v40, %v5113_v16  ;;  %v1595_v47 = vadd.f32 %v1594_v42, %v5115_v17  ;;  %v1483_v53 = vpop.f32.mrb[45].mxu1  ;;  %v1596_v54 = vpop.f32.mrb[77].mxu0  ;;  %2233 = vmatprep.subr.bf16.mxu1 %v4465_v31 }
 0x464   : > { %v1484_v57 = vadd.f32 %v1483_v53, %v5118_v18  ;;  %v1597_v58 = vadd.f32 %v1596_v54, %v5120_v19  ;;  %v1485_v59 = vpop.f32.mrb[46].mxu1  ;;  %v1598_v60 = vpop.f32.mrb[78].mxu0  ;;  %2188 = vmatprep.mubr.bf16.mxu1 %v1758_v38 }
 0x465   : > { %v1486_v61 = vadd.f32 %v1485_v59, %v5113_v16  ;;  %v1599_v63 = vadd.f32 %v1598_v60, %v5115_v17  ;;  %v1487_v1 = vpop.f32.mrb[47].mxu1  ;;  %v1600_v2 = vpop.f32.mrb[79].mxu0  ;;  %2189 = vmatmul.mubr.bf16.gmra.mrb[72].mxu1 %v1757_v36  ;;  %v1659_v8 = vmax.f32 %v1482_v44, 0.0  ;;  %v1661_v50 = vmax.f32 %v1595_v47, 0.0 }
 0x466   : > { %v1488_v3 = vadd.f32 %v1487_v1, %v5118_v18  ;;  %v1601_v5 = vadd.f32 %v1600_v2, %v5120_v19  ;;  %2234 = vmatpush1.bf16.msra.mxu1 %v4463_v49  ;;  %v1660_v11 = vmax.f32 %v1484_v57, 0.0  ;;  %v1662_v12 = vmax.f32 %v1597_v58, 0.0  ;;  %v4469_v18 = vld [vmem:[#allocation7 + $0x260] ss:$8 sps:$4 sm:$0xff]   ;;  %v4474_v19 = vld [vmem:[#allocation7 + $0x274] ss:$8 sps:$4 sm:$0xff]  }
 0x467   : > { %v1663_v9 = vmax.f32 %v1486_v61, 0.0  ;;  %v1665_v10 = vmax.f32 %v1599_v63, 0.0  ;;  %2235 = vmatprep.subr.bf16.mxu1 %v4468_v56  ;;  %v4493_v49 = vld [vmem:[#allocation5 + $0x110] sm:$0xff]  }
 0x468   : > { %v1664_v16 = vmax.f32 %v1488_v3, 0.0  ;;  %v1666_v13 = vmax.f32 %v1601_v5, 0.0 }
 0x469   : > { %v1761_v17 = vpack.c.bf16 %v1663_v9, %v1659_v8  ;;  %v1763_v14 = vpack.c.bf16 %v1665_v10, %v1661_v50 }
 0x46a   : > { %v1762_v20 = vpack.c.bf16 %v1664_v16, %v1660_v11  ;;  %v1764_v22 = vpack.c.bf16 %v1666_v13, %v1662_v12  ;;  %2236 = vmatpush1.bf16.msra.mxu1 %v4466_v6 }
 0x46b   : > { %2237 = vmatprep.subr.bf16.mxu1 %v4471_v51 }
 0x46c   : > { %2198 = vmatprep.mubr.bf16.mxu1 %v1762_v20 }
 0x46d   : > { %2199 = vmatmul.mubr.bf16.gmra.mrb[76].mxu1 %v1761_v17 }
 0x46e   : > { %2238 = vmatpush1.bf16.msra.mxu1 %v4469_v18  ;;  %2241 = vmatprep.mubr.bf16.mxu1 %v5132_v55  ;;  %v4490_v55 = vld [vmem:[#allocation5 + $0xb8] sm:$0xff]  }
 0x46f   : > { %2239 = vmatprep.subr.bf16.mxu1 %v4474_v19 }
 0x472   : > { %2240 = vmatpush1.bf16.msra.mxu1 %v4472_v24 }
 0x475   : > { %2242 = vmatmul.mubr.bf16.vlgmr.msra.gmra.mrb[48].mxu1 %v5130_v52  ;;  %v4489_v52 = vld [vmem:[#allocation5 + $0xf8] sm:$0xff]  }
 0x476   : > { %2251 = vmatprep.mubr.bf16.mxu1 %v5144_v28  ;;  %3759 = vmatprep.subr.bf16.mxu0 %v4489_v52  ;;  %v1732_v28 = vld [vmem:[#allocation10 + $0x4] ss:$8 sm:$0x3] }
 0x477   : > { %3760 = vmatpush3.bf16.msra.mxu0 %v4490_v55 }
 0x47d   : > { %2252 = vmatmul.mubr.bf16.gmra.mrb[52].mxu1 %v5142_v26  ;;  %v4491_v26 = vld [vmem:[#allocation5 + $0x100] sm:$0xff]  }
 0x47e   : > { %2261 = vmatprep.mubr.bf16.mxu1 %v5156_v7  ;;  %3937 = vmatprep.subr.bf16.mxu0 %v4491_v26  ;;  %v5229_v7 = vrot.slane %v1732_v28, %v5070_v48 }
 0x485   : > { %2262 = vmatmul.mubr.bf16.gmra.mrb[56].mxu1 %v5154_v4  ;;  %v5226_v4 = vrot.slane %v1732_v28, %v5067_v46 }
 0x486   : > { %2271 = vmatprep.mubr.bf16.mxu1 %v5168_v43 }
 0x48d   : > { %2272 = vmatmul.mubr.bf16.gmra.mrb[60].mxu1 %v5166_v41 }
 0x48e   : > { %2281 = vmatprep.mubr.bf16.mxu1 %v5180_v23 }
 0x495   : > { %2282 = vmatmul.mubr.bf16.gmra.mrb[64].mxu1 %v5178_v21 }
 0x496   : > { %2291 = vmatprep.mubr.bf16.mxu1 %v5192_v0 }
 0x49d   : > { %2292 = vmatmul.mubr.bf16.gmra.mrb[68].mxu1 %v5190_v62 }
 0x49e   : > { %2301 = vmatprep.mubr.bf16.mxu1 %v1760_v39 }
 0x4a5   : > { %2302 = vmatmul.mubr.bf16.gmra.mrb[72].mxu1 %v5202_v37 }
 0x4a6   : > { %2311 = vmatprep.mubr.bf16.mxu1 %v1764_v22 }
 0x4ad   : > { %2312 = vmatmul.mubr.bf16.gmra.mrb[76].mxu1 %v1763_v14 }
 0x548   : > { %v2243_v41 = vpop.f32.mrb[48].mxu1 }
 0x549   : > { %v4081_v43 = vadd.f32 %v2243_v41, %v5226_v4  ;;  %v2245_v21 = vpop.f32.mrb[49].mxu1 }
 0x54a   : > { %v4082_v23 = vadd.f32 %v2245_v21, %v5229_v7  ;;  %v2247_v62 = vpop.f32.mrb[50].mxu1 }
 0x54b   : > { %v4083_v0 = vadd.f32 %v2247_v62, %v5226_v4  ;;  %v2249_v25 = vpop.f32.mrb[51].mxu1  ;;  %v2322_v15 = vmax.f32 %v4081_v43, 0.0 }
 0x54c   : > { %v4084_v45 = vadd.f32 %v2249_v25, %v5229_v7  ;;  %v2323_v29 = vmax.f32 %v4082_v23, 0.0 }
 0x54d   : > { %v2324_v27 = vmax.f32 %v4083_v0, 0.0 }
 0x54e   : > { %v2325_v46 = vmax.f32 %v4084_v45, 0.0 }
 0x54f   : > { %v2387_v30 = vpack.c.bf16 %v2324_v27, %v2322_v15 }
 0x550   : > { %v2388_v31 = vpack.c.bf16 %v2325_v46, %v2323_v29  ;;  %v2253_v48 = vpop.f32.mrb[52].mxu1 }
 0x551   : > { %v4085_v32 = vadd.f32 %v2253_v48, %v5226_v4  ;;  %v2255_v33 = vpop.f32.mrb[53].mxu1 }
 0x552   : > { %v4086_v35 = vadd.f32 %v2255_v33, %v5229_v7  ;;  %v2257_v36 = vpop.f32.mrb[54].mxu1  ;;  %2531 = vmatprep.mubr.bf16.mxu0 %v2388_v31 }
 0x553   : > { %v4087_v37 = vadd.f32 %v2257_v36, %v5226_v4  ;;  %v2259_v38 = vpop.f32.mrb[55].mxu1  ;;  %2532 = vmatmul.mubr.bf16.vlgmr.msra.gmra.mrb[80].mxu0 %v2387_v30  ;;  %v2326_v40 = vmax.f32 %v4085_v32, 0.0 }
 0x554   : > { %v4088_v39 = vadd.f32 %v2259_v38, %v5229_v7  ;;  %3938 = vmatpush3.bf16.msra.mxu0 %v4491_v26  ;;  %v2327_v44 = vmax.f32 %v4086_v35, 0.0 }
 0x555   : > { %v2328_v42 = vmax.f32 %v4087_v37, 0.0  ;;  %3939 = vmatprep.subr.bf16.mxu0 %v4492_v34 }
 0x556   : > { %v2329_v47 = vmax.f32 %v4088_v39, 0.0 }
 0x557   : > { %v2389_v53 = vpack.c.bf16 %v2328_v42, %v2326_v40 }
 0x558   : > { %v2390_v54 = vpack.c.bf16 %v2329_v47, %v2327_v44  ;;  %v2263_v56 = vpop.f32.mrb[56].mxu1  ;;  %3940 = vmatpush3.bf16.msra.mxu0 %v4492_v34 }
 0x559   : > { %v4089_v57 = vadd.f32 %v2263_v56, %v5226_v4  ;;  %v2265_v58 = vpop.f32.mrb[57].mxu1  ;;  %3941 = vmatprep.subr.bf16.mxu0 %v4493_v49 }
 0x55a   : > { %v4090_v59 = vadd.f32 %v2265_v58, %v5229_v7  ;;  %v2267_v60 = vpop.f32.mrb[58].mxu1  ;;  %2539 = vmatprep.mubr.bf16.mxu0 %v2390_v54 }
 0x55b   : > { %v4091_v61 = vadd.f32 %v2267_v60, %v5226_v4  ;;  %v2269_v63 = vpop.f32.mrb[59].mxu1  ;;  %2540 = vmatmul.mubr.bf16.gmra.mrb[84].mxu0 %v2389_v53  ;;  %v2330_v2 = vmax.f32 %v4089_v57, 0.0 }
 0x55c   : > { %v4092_v1 = vadd.f32 %v2269_v63, %v5229_v7  ;;  %3942 = vmatpush3.bf16.msra.mxu0 %v4493_v49  ;;  %v2331_v5 = vmax.f32 %v4090_v59, 0.0 }
 0x55d   : > { %v2332_v3 = vmax.f32 %v4091_v61, 0.0 }
 0x55e   : > { %v2333_v6 = vmax.f32 %v4092_v1, 0.0 }
 0x55f   : > { %v2391_v8 = vpack.c.bf16 %v2332_v3, %v2330_v2 }
 0x560   : > { %v2392_v50 = vpack.c.bf16 %v2333_v6, %v2331_v5  ;;  %v2273_v9 = vpop.f32.mrb[60].mxu1 }
 0x561   : > { %v4093_v10 = vadd.f32 %v2273_v9, %v5226_v4  ;;  %v2275_v51 = vpop.f32.mrb[61].mxu1 }
 0x562   : > { %v4094_v11 = vadd.f32 %v2275_v51, %v5229_v7  ;;  %v2277_v12 = vpop.f32.mrb[62].mxu1  ;;  %2547 = vmatprep.mubr.bf16.mxu0 %v2392_v50 }
 0x563   : > { %v4095_v16 = vadd.f32 %v2277_v12, %v5226_v4  ;;  %v2279_v13 = vpop.f32.mrb[63].mxu1  ;;  %2548 = vmatmul.mubr.bf16.gmra.mrb[88].mxu0 %v2391_v8  ;;  %v2334_v14 = vmax.f32 %v4093_v10, 0.0 }
 0x564   : > { %v4096_v17 = vadd.f32 %v2279_v13, %v5229_v7  ;;  %v2335_v22 = vmax.f32 %v4094_v11, 0.0 }
 0x565   : > { %v2336_v20 = vmax.f32 %v4095_v16, 0.0 }
 0x566   : > { %v2337_v18 = vmax.f32 %v4096_v17, 0.0 }
 0x567   : > { %v2393_v19 = vpack.c.bf16 %v2336_v20, %v2334_v14  ;;  %v4494_v14 = vld [vmem:[#allocation5 + $0x118] sm:$0xff]   ;;  %v4495_v20 = vld [vmem:[#allocation5 + $0x120] sm:$0xff]  }
 0x568   : > { %v2394_v24 = vpack.c.bf16 %v2337_v18, %v2335_v22  ;;  %v2283_v52 = vpop.f32.mrb[64].mxu1  ;;  %3943 = vmatprep.subr.bf16.mxu0 %v4494_v14  ;;  %v4496_v22 = vld [vmem:[#allocation5 + $0x128] sm:$0xff]   ;;  %v4499_v18 = vld [vmem:[#allocation5 + $0x140] sm:$0xff]  }
 0x569   : > { %v4097_v55 = vadd.f32 %v2283_v52, %v5226_v4  ;;  %v2285_v26 = vpop.f32.mrb[65].mxu1  ;;  %3944 = vmatpush3.bf16.msra.mxu0 %v4494_v14 }
 0x56a   : > { %v4098_v28 = vadd.f32 %v2285_v26, %v5229_v7  ;;  %v2287_v41 = vpop.f32.mrb[66].mxu1  ;;  %2555 = vmatprep.mubr.bf16.mxu0 %v2394_v24  ;;  %3945 = vmatprep.subr.bf16.mxu0 %v4495_v20  ;;  %v5263_v24 = vld [vmem:[#allocation10 + $0x5] ss:$0 sm:$0xff] }
 0x56b   : > { %v4099_v43 = vadd.f32 %v2287_v41, %v5226_v4  ;;  %v2289_v21 = vpop.f32.mrb[67].mxu1  ;;  %2556 = vmatmul.mubr.bf16.gmra.mrb[92].mxu0 %v2393_v19  ;;  %v2338_v62 = vmax.f32 %v4097_v55, 0.0 }
 0x56c   : > { %v4100_v23 = vadd.f32 %v2289_v21, %v5229_v7  ;;  %v2339_v25 = vmax.f32 %v4098_v28, 0.0 }
 0x56d   : > { %v2340_v0 = vmax.f32 %v4099_v43, 0.0  ;;  %3946 = vmatpush3.bf16.msra.mxu0 %v4495_v20 }
 0x56e   : > { %v2341_v45 = vmax.f32 %v4100_v23, 0.0  ;;  %3947 = vmatprep.subr.bf16.mxu0 %v4496_v22 }
 0x56f   : > { %v2395_v15 = vpack.c.bf16 %v2340_v0, %v2338_v62 }
 0x570   : > { %v2396_v27 = vpack.c.bf16 %v2341_v45, %v2339_v25  ;;  %v2293_v29 = vpop.f32.mrb[68].mxu1 }
 0x571   : > { %v4101_v46 = vadd.f32 %v2293_v29, %v5226_v4  ;;  %v2295_v30 = vpop.f32.mrb[69].mxu1  ;;  %3948 = vmatpush3.bf16.msra.mxu0 %v4496_v22 }
 0x572   : > { %v4102_v31 = vadd.f32 %v2295_v30, %v5229_v7  ;;  %v2297_v48 = vpop.f32.mrb[70].mxu1  ;;  %2563 = vmatprep.mubr.bf16.mxu0 %v2396_v27 }
 0x573   : > { %v4103_v32 = vadd.f32 %v2297_v48, %v5226_v4  ;;  %v2299_v33 = vpop.f32.mrb[71].mxu1  ;;  %2564 = vmatmul.mubr.bf16.gmra.mrb[96].mxu0 %v2395_v15  ;;  %v2342_v35 = vmax.f32 %v4101_v46, 0.0 }
 0x574   : > { %v4104_v34 = vadd.f32 %v2299_v33, %v5229_v7  ;;  %v2343_v37 = vmax.f32 %v4102_v31, 0.0 }
 0x575   : > { %v2344_v36 = vmax.f32 %v4103_v32, 0.0 }
 0x576   : > { %v2345_v38 = vmax.f32 %v4104_v34, 0.0 }
 0x577   : > { %v2397_v39 = vpack.c.bf16 %v2344_v36, %v2342_v35 }
 0x578   : > { %v2398_v40 = vpack.c.bf16 %v2345_v38, %v2343_v37  ;;  %v2303_v42 = vpop.f32.mrb[72].mxu1  ;;  %v4500_v38 = vld [vmem:[#allocation5 + $0x148] sm:$0xff]  }
 0x579   : > { %v4105_v49 = vadd.f32 %v2303_v42, %v5226_v4  ;;  %v2305_v44 = vpop.f32.mrb[73].mxu1 }
 0x57a   : > { %v4106_v47 = vadd.f32 %v2305_v44, %v5229_v7  ;;  %v2307_v53 = vpop.f32.mrb[74].mxu1  ;;  %2571 = vmatprep.mubr.bf16.mxu0 %v2398_v40  ;;  %v4501_v44 = vld [vmem:[#allocation5 + $0x150] sm:$0xff]  }
 0x57b   : > { %v4107_v54 = vadd.f32 %v2307_v53, %v5226_v4  ;;  %v2309_v56 = vpop.f32.mrb[75].mxu1  ;;  %2572 = vmatmul.mubr.bf16.gmra.mrb[100].mxu0 %v2397_v39  ;;  %v2346_v58 = vmax.f32 %v4105_v49, 0.0 }
 0x57c   : > { %v4108_v57 = vadd.f32 %v2309_v56, %v5229_v7  ;;  %v2347_v60 = vmax.f32 %v4106_v47, 0.0 }
 0x57d   : > { %v2348_v59 = vmax.f32 %v4107_v54, 0.0 }
 0x57e   : > { %v2349_v61 = vmax.f32 %v4108_v57, 0.0 }
 0x57f   : > { %v2399_v63 = vpack.c.bf16 %v2348_v59, %v2346_v58 }
 0x580   : > { %v2400_v1 = vpack.c.bf16 %v2349_v61, %v2347_v60  ;;  %v2313_v2 = vpop.f32.mrb[76].mxu1  ;;  %v4502_v60 = vld [vmem:[#allocation5 + $0x158] sm:$0xff]  }
 0x581   : > { %v4109_v3 = vadd.f32 %v2313_v2, %v5226_v4  ;;  %v2315_v5 = vpop.f32.mrb[77].mxu1 }
 0x582   : > { %v4110_v6 = vadd.f32 %v2315_v5, %v5229_v7  ;;  %v2317_v8 = vpop.f32.mrb[78].mxu1  ;;  %2579 = vmatprep.mubr.bf16.mxu0 %v2400_v1 }
 0x583   : > { %v4111_v50 = vadd.f32 %v2317_v8, %v5226_v4  ;;  %v2319_v9 = vpop.f32.mrb[79].mxu1  ;;  %2580 = vmatmul.mubr.bf16.gmra.mrb[104].mxu0 %v2399_v63  ;;  %v2350_v51 = vmax.f32 %v4109_v3, 0.0  ;;  %v4497_v4 = vld [vmem:[#allocation5 + $0x130] sm:$0xff]   ;;  %v4503_v3 = vld [vmem:[#allocation5 + $0x160] sm:$0xff]  }
 0x584   : > { %v4112_v10 = vadd.f32 %v2319_v9, %v5229_v7  ;;  %v2351_v12 = vmax.f32 %v4110_v6, 0.0  ;;  %3949 = vmatprep.subr.bf16.mxu0 %v4497_v4  ;;  %v4498_v7 = vld [vmem:[#allocation5 + $0x138] sm:$0xff]  }
 0x585   : > { %v2352_v11 = vmax.f32 %v4111_v50, 0.0  ;;  %3950 = vmatpush3.bf16.msra.mxu0 %v4497_v4 }
 0x586   : > { %v2353_v16 = vmax.f32 %v4112_v10, 0.0  ;;  %3951 = vmatprep.subr.bf16.mxu0 %v4498_v7 }
 0x587   : > { %v2401_v13 = vpack.c.bf16 %v2352_v11, %v2350_v51  ;;  %v4504_v11 = vld [vmem:[#allocation5 + $0x168] sm:$0xff]  }
 0x588   : > { %v2402_v17 = vpack.c.bf16 %v2353_v16, %v2351_v12 }
 0x589   : > { %3952 = vmatpush3.bf16.msra.mxu0 %v4498_v7 }
 0x58a   : > { %2587 = vmatprep.mubr.bf16.mxu0 %v2402_v17  ;;  %3969 = vmatprep.subr.bf16.mxu0 %v4499_v18 }
 0x58b   : > { %2588 = vmatmul.mubr.bf16.gmra.mrb[108].mxu0 %v2401_v13 }
 0x626   : > { %v3761_v19 = vpop.f32.mrb[80].mxu0 }
 0x627   : > { %v3762_v52 = vpop.f32.mrb[81].mxu0 }
 0x628   : > { %v3763_v55 = vadd.f32 %v3762_v52, %v3761_v19  ;;  %v3764_v26 = vpop.f32.mrb[82].mxu0 }
 0x629   : > { %v3765_v28 = vpop.f32.mrb[83].mxu0 }
 0x62a   : > { %v2534_v41 = vadd.f32 %v3763_v55, %v5263_v24  ;;  %v3766_v43 = vadd.f32 %v3765_v28, %v3764_v26 }
 0x62c   : > { %v2537_v21 = vadd.f32 %v3766_v43, %v5263_v24  ;;  %v2596_v23 = vmax.f32 %v2534_v41, 0.0 }
 0x62e   : > { %v2597_v62 = vmax.f32 %v2537_v21, 0.0  ;;  %v3767_v0 = vpop.f32.mrb[84].mxu0 }
 0x62f   : > { %v3768_v25 = vpop.f32.mrb[85].mxu0 }
 0x630   : > { %v3769_v45 = vadd.f32 %v3768_v25, %v3767_v0  ;;  %v3770_v15 = vpop.f32.mrb[86].mxu0  ;;  %v2629_v27 = vpack.c.bf16 %v2597_v62, %v2596_v23 }
 0x631   : > { %v3771_v29 = vpop.f32.mrb[87].mxu0 }
 0x632   : > { %v2542_v46 = vadd.f32 %v3769_v45, %v5263_v24  ;;  %v3772_v30 = vadd.f32 %v3771_v29, %v3770_v15  ;;  %3953 = vmatprep.mubr.bf16.mxu0 %v2629_v27 }
 0x634   : > { %v2545_v31 = vadd.f32 %v3772_v30, %v5263_v24  ;;  %v2598_v48 = vmax.f32 %v2542_v46, 0.0 }
 0x636   : > { %v2599_v32 = vmax.f32 %v2545_v31, 0.0  ;;  %v3773_v33 = vpop.f32.mrb[88].mxu0 }
 0x637   : > { %v3774_v34 = vpop.f32.mrb[89].mxu0 }
 0x638   : > { %v2630_v35 = vpack.c.bf16 %v2599_v32, %v2598_v48  ;;  %v3775_v36 = vadd.f32 %v3774_v34, %v3773_v33  ;;  %v3776_v37 = vpop.f32.mrb[90].mxu0 }
 0x639   : > { %v3777_v39 = vpop.f32.mrb[91].mxu0 }
 0x63a   : > { %v2550_v40 = vadd.f32 %v3775_v36, %v5263_v24  ;;  %v3778_v42 = vadd.f32 %v3777_v39, %v3776_v37  ;;  %3954 = vmatmul.mubr.bf16.vlgmr.msra.gmra.mrb[112].mxu0 %v2630_v35 }
 0x63b   : > { %3970 = vmatpush3.bf16.msra.mxu0 %v4499_v18 }
 0x63c   : > { %v2553_v49 = vadd.f32 %v3778_v42, %v5263_v24  ;;  %3971 = vmatprep.subr.bf16.mxu0 %v4500_v38  ;;  %v2600_v47 = vmax.f32 %v2550_v40, 0.0 }
 0x63e   : > { %v2601_v53 = vmax.f32 %v2553_v49, 0.0  ;;  %v3779_v54 = vpop.f32.mrb[92].mxu0  ;;  %v4505_v49 = vld [vmem:[#allocation5 + $0x170] sm:$0xff]  }
 0x63f   : > { %v3780_v56 = vpop.f32.mrb[93].mxu0  ;;  %3972 = vmatpush3.bf16.msra.mxu0 %v4500_v38 }
 0x640   : > { %v3781_v57 = vadd.f32 %v3780_v56, %v3779_v54  ;;  %v3782_v58 = vpop.f32.mrb[94].mxu0  ;;  %v2631_v59 = vpack.c.bf16 %v2601_v53, %v2600_v47  ;;  %3973 = vmatprep.subr.bf16.mxu0 %v4501_v44  ;;  %v4507_v47 = vld [vmem:[#allocation5 + $0x180] sm:$0xff]   ;;  %v4508_v53 = vld [vmem:[#allocation5 + $0x188] sm:$0xff]   ;;  %v4509_v54 = vld [vmem:[#allocation5 + $0x190] sm:$0xff]  }
 0x641   : > { %v3783_v61 = vpop.f32.mrb[95].mxu0  ;;  %4001 = vmatprep.subr.bf16.mxu1 %v4507_v47  ;;  %v4510_v56 = vld [vmem:[#allocation5 + $0x198] sm:$0xff]  }
 0x642   : > { %v2558_v63 = vadd.f32 %v3781_v57, %v5263_v24  ;;  %v3784_v1 = vadd.f32 %v3783_v61, %v3782_v58  ;;  %3957 = vmatprep.mubr.bf16.mxu0 %v2631_v59  ;;  %4002 = vmatpush3.bf16.msra.mxu1 %v4507_v47  ;;  %v4512_v57 = vld [vmem:[#allocation5 + $0x1a8] sm:$0xff]   ;;  %v2628_v58 = vld [vmem:[#allocation10 + $0x6] ss:$0 sm:$0xff]  ;;  %v4514_v47 = vld [vmem:[#allocation5 + $0x1b8] sm:$0xff]  }
 0x643   : > { %3974 = vmatpush3.bf16.msra.mxu0 %v4501_v44  ;;  %v4506_v44 = vld [vmem:[#allocation5 + $0x178] sm:$0xff]   ;;  %4003 = vmatprep.subr.bf16.mxu1 %v4508_v53 }
 0x644   : > { %v2561_v2 = vadd.f32 %v3784_v1, %v5263_v24  ;;  %3975 = vmatprep.subr.bf16.mxu0 %v4502_v60  ;;  %v2602_v5 = vmax.f32 %v2558_v63, 0.0 }
 0x646   : > { %v2603_v6 = vmax.f32 %v2561_v2, 0.0  ;;  %v3785_v8 = vpop.f32.mrb[96].mxu0  ;;  %4004 = vmatpush3.bf16.msra.mxu1 %v4508_v53  ;;  %v4515_v53 = vld [vmem:[#allocation5 + $0x1c0] sm:$0xff]  }
 0x647   : > { %v3786_v50 = vpop.f32.mrb[97].mxu0  ;;  %3976 = vmatpush3.bf16.msra.mxu0 %v4502_v60  ;;  %4005 = vmatprep.subr.bf16.mxu1 %v4509_v54 }
 0x648   : > { %v3787_v9 = vadd.f32 %v3786_v50, %v3785_v8  ;;  %v3788_v10 = vpop.f32.mrb[98].mxu0  ;;  %v2632_v51 = vpack.c.bf16 %v2603_v6, %v2602_v5  ;;  %3977 = vmatprep.subr.bf16.mxu0 %v4503_v3 }
 0x649   : > { %v3789_v12 = vpop.f32.mrb[99].mxu0 }
 0x64a   : > { %v2566_v16 = vadd.f32 %v3787_v9, %v5263_v24  ;;  %v3790_v13 = vadd.f32 %v3789_v12, %v3788_v10  ;;  %3958 = vmatmul.mubr.bf16.gmra.mrb[116].mxu0 %v2632_v51  ;;  %4006 = vmatpush3.bf16.msra.mxu1 %v4509_v54  ;;  %v4516_v54 = vld [vmem:[#allocation5 + $0x1c8] sm:$0xff]  }
 0x64b   : > { %3978 = vmatpush3.bf16.msra.mxu0 %v4503_v3  ;;  %4007 = vmatprep.subr.bf16.mxu1 %v4510_v56 }
 0x64c   : > { %v2569_v17 = vadd.f32 %v3790_v13, %v5263_v24  ;;  %3979 = vmatprep.subr.bf16.mxu0 %v4504_v11  ;;  %v2604_v14 = vmax.f32 %v2566_v16, 0.0 }
 0x64e   : > { %v2605_v20 = vmax.f32 %v2569_v17, 0.0  ;;  %v3791_v22 = vpop.f32.mrb[100].mxu0  ;;  %4008 = vmatpush3.bf16.msra.mxu1 %v4510_v56  ;;  %v4517_v56 = vld [vmem:[#allocation5 + $0x1d0] sm:$0xff]  }
 0x64f   : > { %v3792_v4 = vpop.f32.mrb[101].mxu0  ;;  %3980 = vmatpush3.bf16.msra.mxu0 %v4504_v11 }
 0x650   : > { %v3793_v7 = vadd.f32 %v3792_v4, %v3791_v22  ;;  %v3794_v18 = vpop.f32.mrb[102].mxu0  ;;  %v2633_v19 = vpack.c.bf16 %v2605_v20, %v2604_v14  ;;  %3981 = vmatprep.subr.bf16.mxu0 %v4505_v49 }
 0x651   : > { %v3795_v52 = vpop.f32.mrb[103].mxu0 }
 0x652   : > { %v2574_v55 = vadd.f32 %v3793_v7, %v5263_v24  ;;  %v3796_v26 = vadd.f32 %v3795_v52, %v3794_v18  ;;  %3961 = vmatprep.mubr.bf16.mxu0 %v2633_v19 }
 0x653   : > { %3982 = vmatpush3.bf16.msra.mxu0 %v4505_v49 }
 0x654   : > { %v2577_v28 = vadd.f32 %v3796_v26, %v5263_v24  ;;  %v2606_v41 = vmax.f32 %v2574_v55, 0.0  ;;  %3983 = vmatprep.subr.bf16.mxu0 %v4506_v44 }
 0x656   : > { %v2607_v43 = vmax.f32 %v2577_v28, 0.0  ;;  %v3797_v21 = vpop.f32.mrb[104].mxu0 }
 0x657   : > { %v3798_v23 = vpop.f32.mrb[105].mxu0  ;;  %3984 = vmatpush3.bf16.msra.mxu0 %v4506_v44  ;;  %v4513_v44 = vld [vmem:[#allocation5 + $0x1b0] sm:$0xff]  }
 0x658   : > { %v3799_v62 = vadd.f32 %v3798_v23, %v3797_v21  ;;  %v3800_v0 = vpop.f32.mrb[106].mxu0  ;;  %v2634_v25 = vpack.c.bf16 %v2607_v43, %v2606_v41  ;;  %4033 = vmatprep.subr.bf16.mxu0 %v4515_v53 }
 0x659   : > { %v3801_v45 = vpop.f32.mrb[107].mxu0 }
 0x65a   : > { %v2582_v15 = vadd.f32 %v3799_v62, %v5263_v24  ;;  %v3802_v27 = vadd.f32 %v3801_v45, %v3800_v0  ;;  %3962 = vmatmul.mubr.bf16.gmra.mrb[120].mxu0 %v2634_v25 }
 0x65c   : > { %v2585_v29 = vadd.f32 %v3802_v27, %v5263_v24  ;;  %v2608_v46 = vmax.f32 %v2582_v15, 0.0 }
 0x65e   : > { %v2609_v30 = vmax.f32 %v2585_v29, 0.0  ;;  %v3803_v31 = vpop.f32.mrb[108].mxu0 }
 0x65f   : > { %v3804_v48 = vpop.f32.mrb[109].mxu0 }
 0x660   : > { %v3805_v32 = vadd.f32 %v3804_v48, %v3803_v31  ;;  %v3806_v33 = vpop.f32.mrb[110].mxu0  ;;  %v2635_v34 = vpack.c.bf16 %v2609_v30, %v2608_v46 }
 0x661   : > { %v3807_v35 = vpop.f32.mrb[111].mxu0 }
 0x662   : > { %v2590_v36 = vadd.f32 %v3805_v32, %v5263_v24  ;;  %v3808_v37 = vadd.f32 %v3807_v35, %v3806_v33  ;;  %3965 = vmatprep.mubr.bf16.mxu0 %v2635_v34 }
 0x664   : > { %v2593_v38 = vadd.f32 %v3808_v37, %v5263_v24  ;;  %v2610_v39 = vmax.f32 %v2590_v36, 0.0  ;;  %v4511_v24 = vld [vmem:[#allocation5 + $0x1a0] sm:$0xff]  }
 0x665   : > { %4009 = vmatprep.subr.bf16.mxu1 %v4511_v24 }
 0x666   : > { %v2611_v40 = vmax.f32 %v2593_v38, 0.0  ;;  %4010 = vmatpush3.bf16.msra.mxu1 %v4511_v24  ;;  %v4518_v24 = vld [vmem:[#allocation5 + $0x1d8] sm:$0xff]  }
 0x667   : > { %4011 = vmatprep.subr.bf16.mxu1 %v4512_v57 }
 0x668   : > { %v2636_v42 = vpack.c.bf16 %v2611_v40, %v2610_v39 }
 0x66a   : > { %3966 = vmatmul.mubr.bf16.gmra.mrb[124].mxu0 %v2636_v42  ;;  %4012 = vmatpush3.bf16.msra.mxu1 %v4512_v57  ;;  %v4519_v57 = vld [vmem:[#allocation5 + $0x1e0] sm:$0xff]  }
 0x66b   : > { %4013 = vmatprep.subr.bf16.mxu1 %v4513_v44 }
 0x66e   : > { %4014 = vmatpush3.bf16.msra.mxu1 %v4513_v44 }
 0x66f   : > { %4015 = vmatprep.subr.bf16.mxu1 %v4514_v47 }
 0x672   : > { %4016 = vmatpush3.bf16.msra.mxu1 %v4514_v47  ;;  %v4521_v47 = vld [vmem:[#allocation5 + $0x1f0] sm:$0xff]  }
 0x673   : > { %4065 = vmatprep.subr.bf16.mxu1 %v4515_v53 }
 0x70d   : > { %v3955_v59 = vpop.f32.mrb[112].mxu0 }
 0x70e   : > { %v2728_v60 = vadd.f32 %v3955_v59, %v2628_v58  ;;  %v2719_v61 = vpop.f32.mrb[113].mxu0  ;;  %v5281_v59 = vld [vmem:[#allocation10 + $0x7] ss:$0 sm:$0xff] }
 0x70f   : > { %v2720_v63 = vadd.f32 %v2719_v61, %v2628_v58  ;;  %v3956_v1 = vpop.f32.mrb[114].mxu0 }
 0x710   : > { %v2731_v2 = vadd.f32 %v3956_v1, %v2628_v58  ;;  %v2722_v3 = vpop.f32.mrb[115].mxu0  ;;  %v2784_v6 = vmax.f32 %v2728_v60, 0.0 }
 0x711   : > { %v2723_v5 = vadd.f32 %v2722_v3, %v2628_v58  ;;  %v2782_v50 = vmax.f32 %v2720_v63, 0.0 }
 0x712   : > { %v2785_v8 = vmax.f32 %v2731_v2, 0.0 }
 0x713   : > { %v2783_v9 = vmax.f32 %v2723_v5, 0.0 }
 0x714   : > { %v2816_v10 = vpack.c.bf16 %v2785_v8, %v2784_v6 }
 0x715   : > { %v2815_v51 = vpack.c.bf16 %v2783_v9, %v2782_v50 }
 0x717   : > { %3985 = vmatprep.mubr.bf16.mxu0 %v2815_v51 }
 0x718   : > { %3986 = vmatmul.mubr.bf16.vlgmr.msra.gmra.mrb[128].mxu0 %v2816_v10 }
 0x719   : > { %4034 = vmatpush3.bf16.msra.mxu0 %v4515_v53 }
 0x71a   : > { %4035 = vmatprep.subr.bf16.mxu0 %v4516_v54 }
 0x71d   : > { %v3959_v11 = vpop.f32.mrb[116].mxu0  ;;  %4036 = vmatpush3.bf16.msra.mxu0 %v4516_v54 }
 0x71e   : > { %v2744_v12 = vadd.f32 %v3959_v11, %v2628_v58  ;;  %v2735_v16 = vpop.f32.mrb[117].mxu0  ;;  %4037 = vmatprep.subr.bf16.mxu0 %v4517_v56 }
 0x71f   : > { %v2736_v13 = vadd.f32 %v2735_v16, %v2628_v58  ;;  %v3960_v17 = vpop.f32.mrb[118].mxu0 }
 0x720   : > { %v2747_v14 = vadd.f32 %v3960_v17, %v2628_v58  ;;  %v2738_v20 = vpop.f32.mrb[119].mxu0  ;;  %v2788_v4 = vmax.f32 %v2744_v12, 0.0 }
 0x721   : > { %v2739_v22 = vadd.f32 %v2738_v20, %v2628_v58  ;;  %v2786_v18 = vmax.f32 %v2736_v13, 0.0  ;;  %4038 = vmatpush3.bf16.msra.mxu0 %v4517_v56 }
 0x722   : > { %v2789_v7 = vmax.f32 %v2747_v14, 0.0  ;;  %4039 = vmatprep.subr.bf16.mxu0 %v4518_v24 }
 0x723   : > { %v2787_v19 = vmax.f32 %v2739_v22, 0.0 }
 0x724   : > { %v2818_v52 = vpack.c.bf16 %v2789_v7, %v2788_v4 }
 0x725   : > { %v2817_v55 = vpack.c.bf16 %v2787_v19, %v2786_v18  ;;  %4040 = vmatpush3.bf16.msra.mxu0 %v4518_v24 }
 0x726   : > { %4041 = vmatprep.subr.bf16.mxu0 %v4519_v57 }
 0x727   : > { %3989 = vmatprep.mubr.bf16.mxu0 %v2817_v55 }
 0x728   : > { %3990 = vmatmul.mubr.bf16.gmra.mrb[132].mxu0 %v2818_v52 }
 0x729   : > { %4042 = vmatpush3.bf16.msra.mxu0 %v4519_v57 }
 0x72d   : > { %v3963_v26 = vpop.f32.mrb[120].mxu0 }
 0x72e   : > { %v2760_v28 = vadd.f32 %v3963_v26, %v2628_v58  ;;  %v2751_v41 = vpop.f32.mrb[121].mxu0 }
 0x72f   : > { %v2752_v43 = vadd.f32 %v2751_v41, %v2628_v58  ;;  %v3964_v21 = vpop.f32.mrb[122].mxu0 }
 0x730   : > { %v2763_v23 = vadd.f32 %v3964_v21, %v2628_v58  ;;  %v2754_v62 = vpop.f32.mrb[123].mxu0  ;;  %v2792_v25 = vmax.f32 %v2760_v28, 0.0 }
 0x731   : > { %v2755_v0 = vadd.f32 %v2754_v62, %v2628_v58  ;;  %v2790_v15 = vmax.f32 %v2752_v43, 0.0 }
 0x732   : > { %v2793_v45 = vmax.f32 %v2763_v23, 0.0 }
 0x733   : > { %v2791_v27 = vmax.f32 %v2755_v0, 0.0 }
 0x734   : > { %v2820_v29 = vpack.c.bf16 %v2793_v45, %v2792_v25 }
 0x735   : > { %v2819_v46 = vpack.c.bf16 %v2791_v27, %v2790_v15 }
 0x737   : > { %3993 = vmatprep.mubr.bf16.mxu0 %v2819_v46 }
 0x738   : > { %3994 = vmatmul.mubr.bf16.gmra.mrb[136].mxu0 %v2820_v29 }
 0x73d   : > { %v3967_v30 = vpop.f32.mrb[124].mxu0 }
 0x73e   : > { %v2776_v31 = vadd.f32 %v3967_v30, %v2628_v58  ;;  %v2767_v48 = vpop.f32.mrb[125].mxu0 }
 0x73f   : > { %v2768_v32 = vadd.f32 %v2767_v48, %v2628_v58  ;;  %v3968_v33 = vpop.f32.mrb[126].mxu0 }
 0x740   : > { %v2779_v34 = vadd.f32 %v3968_v33, %v2628_v58  ;;  %v2770_v35 = vpop.f32.mrb[127].mxu0  ;;  %v2796_v37 = vmax.f32 %v2776_v31, 0.0 }
 0x741   : > { %v2771_v36 = vadd.f32 %v2770_v35, %v2628_v58  ;;  %v2794_v39 = vmax.f32 %v2768_v32, 0.0  ;;  %v4520_v58 = vld [vmem:[#allocation5 + $0x1e8] sm:$0xff]  }
 0x742   : > { %v2797_v38 = vmax.f32 %v2779_v34, 0.0  ;;  %4043 = vmatprep.subr.bf16.mxu0 %v4520_v58 }
 0x743   : > { %v2795_v40 = vmax.f32 %v2771_v36, 0.0  ;;  %4044 = vmatpush3.bf16.msra.mxu0 %v4520_v58 }
 0x744   : > { %v2822_v42 = vpack.c.bf16 %v2797_v38, %v2796_v37  ;;  %4045 = vmatprep.subr.bf16.mxu0 %v4521_v47 }
 0x745   : > { %v2821_v49 = vpack.c.bf16 %v2795_v40, %v2794_v39 }
 0x747   : > { %3997 = vmatprep.mubr.bf16.mxu0 %v2821_v49  ;;  %4046 = vmatpush3.bf16.msra.mxu0 %v4521_v47 }
 0x748   : > { %3998 = vmatmul.mubr.bf16.gmra.mrb[140].mxu0 %v2822_v42 }
 0x7eb   : > { %v3987_v60 = vpop.f32.mrb[128].mxu0 }
 0x7ec   : > { %v2914_v61 = vadd.f32 %v3987_v60, %v5281_v59  ;;  %v2905_v63 = vpop.f32.mrb[129].mxu0 }
 0x7ed   : > { %v2906_v1 = vadd.f32 %v2905_v63, %v5281_v59  ;;  %v3988_v2 = vpop.f32.mrb[130].mxu0 }
 0x7ee   : > { %v2917_v3 = vadd.f32 %v3988_v2, %v5281_v59  ;;  %v2908_v5 = vpop.f32.mrb[131].mxu0  ;;  %v2970_v8 = vmax.f32 %v2914_v61, 0.0 }
 0x7ef   : > { %v2909_v6 = vadd.f32 %v2908_v5, %v5281_v59  ;;  %v2968_v9 = vmax.f32 %v2906_v1, 0.0 }
 0x7f0   : > { %v2971_v50 = vmax.f32 %v2917_v3, 0.0 }
 0x7f1   : > { %v2969_v10 = vmax.f32 %v2909_v6, 0.0 }
 0x7f2   : > { %v3002_v51 = vpack.c.bf16 %v2971_v50, %v2970_v8 }
 0x7f3   : > { %v3001_v11 = vpack.c.bf16 %v2969_v10, %v2968_v9 }
 0x7f5   : > { %4017 = vmatprep.mubr.bf16.mxu1 %v3001_v11 }
 0x7f6   : > { %4018 = vmatmul.mubr.bf16.vlgmr.msra.gmra.mrb[80].mxu1 %v3002_v51 }
 0x7f7   : > { %4073 = vmatpush3.bf16.msra.mxu1 %v4515_v53  ;;  %v4522_v53 = vld [vmem:[#allocation5 + $0x1f8] sm:$0xff]  }
 0x7f8   : > { %4066 = vmatprep.subr.bf16.mxu1 %v4516_v54  ;;  %4047 = vmatprep.subr.bf16.mxu0 %v4522_v53 }
 0x7f9   : > { %4048 = vmatpush3.bf16.msra.mxu0 %v4522_v53 }
 0x7fb   : > { %v3991_v12 = vpop.f32.mrb[132].mxu0  ;;  %4074 = vmatpush3.bf16.msra.mxu1 %v4516_v54  ;;  %v3000_v54 = vld [vmem:[#allocation10 + $0x20] ss:$0 sm:$0xff] }
 0x7fc   : > { %v2930_v16 = vadd.f32 %v3991_v12, %v5281_v59  ;;  %v2921_v13 = vpop.f32.mrb[133].mxu0  ;;  %4067 = vmatprep.subr.bf16.mxu1 %v4517_v56 }
 0x7fd   : > { %v2922_v17 = vadd.f32 %v2921_v13, %v5281_v59  ;;  %v3992_v14 = vpop.f32.mrb[134].mxu0 }
 0x7fe   : > { %v2933_v20 = vadd.f32 %v3992_v14, %v5281_v59  ;;  %v2924_v22 = vpop.f32.mrb[135].mxu0  ;;  %v2974_v7 = vmax.f32 %v2930_v16, 0.0 }
 0x7ff   : > { %v2925_v4 = vadd.f32 %v2924_v22, %v5281_v59  ;;  %4075 = vmatpush3.bf16.msra.mxu1 %v4517_v56  ;;  %v2972_v19 = vmax.f32 %v2922_v17, 0.0 }
 0x800   : > { %v2975_v18 = vmax.f32 %v2933_v20, 0.0  ;;  %4068 = vmatprep.subr.bf16.mxu1 %v4518_v24 }
 0x801   : > { %v2973_v52 = vmax.f32 %v2925_v4, 0.0 }
 0x802   : > { %v3004_v55 = vpack.c.bf16 %v2975_v18, %v2974_v7 }
 0x803   : > { %v3003_v26 = vpack.c.bf16 %v2973_v52, %v2972_v19  ;;  %4076 = vmatpush3.bf16.msra.mxu1 %v4518_v24 }
 0x804   : > { %4069 = vmatprep.subr.bf16.mxu1 %v4519_v57 }
 0x805   : > { %4021 = vmatprep.mubr.bf16.mxu1 %v3003_v26 }
 0x806   : > { %4022 = vmatmul.mubr.bf16.gmra.mrb[84].mxu1 %v3004_v55 }
 0x807   : > { %4077 = vmatpush3.bf16.msra.mxu1 %v4519_v57 }
 0x808   : > { %4070 = vmatprep.subr.bf16.mxu1 %v4520_v58 }
 0x80b   : > { %v3995_v28 = vpop.f32.mrb[136].mxu0  ;;  %4078 = vmatpush3.bf16.msra.mxu1 %v4520_v58 }
 0x80c   : > { %v2946_v41 = vadd.f32 %v3995_v28, %v5281_v59  ;;  %v2937_v43 = vpop.f32.mrb[137].mxu0  ;;  %4071 = vmatprep.subr.bf16.mxu1 %v4521_v47 }
 0x80d   : > { %v2938_v21 = vadd.f32 %v2937_v43, %v5281_v59  ;;  %v3996_v23 = vpop.f32.mrb[138].mxu0 }
 0x80e   : > { %v2949_v62 = vadd.f32 %v3996_v23, %v5281_v59  ;;  %v2940_v0 = vpop.f32.mrb[139].mxu0  ;;  %v2978_v45 = vmax.f32 %v2946_v41, 0.0 }
 0x80f   : > { %v2941_v25 = vadd.f32 %v2940_v0, %v5281_v59  ;;  %v2976_v27 = vmax.f32 %v2938_v21, 0.0  ;;  %4079 = vmatpush3.bf16.msra.mxu1 %v4521_v47 }
 0x810   : > { %v2979_v15 = vmax.f32 %v2949_v62, 0.0  ;;  %4072 = vmatprep.subr.bf16.mxu1 %v4522_v53 }
 0x811   : > { %v2977_v29 = vmax.f32 %v2941_v25, 0.0 }
 0x812   : > { %v3006_v46 = vpack.c.bf16 %v2979_v15, %v2978_v45 }
 0x813   : > { %v3005_v30 = vpack.c.bf16 %v2977_v29, %v2976_v27  ;;  %4080 = vmatpush3.bf16.msra.mxu1 %v4522_v53 }
 0x815   : > { %4025 = vmatprep.mubr.bf16.mxu1 %v3005_v30 }
 0x816   : > { %4026 = vmatmul.mubr.bf16.gmra.mrb[88].mxu1 %v3006_v46 }
 0x81b   : > { %v3999_v31 = vpop.f32.mrb[140].mxu0 }
 0x81c   : > { %v2962_v48 = vadd.f32 %v3999_v31, %v5281_v59  ;;  %v2953_v32 = vpop.f32.mrb[141].mxu0 }
 0x81d   : > { %v2954_v33 = vadd.f32 %v2953_v32, %v5281_v59  ;;  %v4000_v34 = vpop.f32.mrb[142].mxu0 }
 0x81e   : > { %v2965_v35 = vadd.f32 %v4000_v34, %v5281_v59  ;;  %v2956_v36 = vpop.f32.mrb[143].mxu0  ;;  %v2982_v38 = vmax.f32 %v2962_v48, 0.0 }
 0x81f   : > { %v2957_v37 = vadd.f32 %v2956_v36, %v5281_v59  ;;  %v2980_v40 = vmax.f32 %v2954_v33, 0.0 }
 0x820   : > { %v2983_v39 = vmax.f32 %v2965_v35, 0.0 }
 0x821   : > { %v2981_v42 = vmax.f32 %v2957_v37, 0.0 }
 0x822   : > { %v3008_v49 = vpack.c.bf16 %v2983_v39, %v2982_v38  ;;  %v3186_v39 = vld [vmem:[#allocation10 + $0x21] ss:$0 sm:$0xff] }
 0x823   : > { %v3007_v44 = vpack.c.bf16 %v2981_v42, %v2980_v40 }
 0x825   : > { %4029 = vmatprep.mubr.bf16.mxu1 %v3007_v44 }
 0x826   : > { %4030 = vmatmul.mubr.bf16.gmra.mrb[92].mxu1 %v3008_v49 }
 0x8c9   : > { %v4019_v56 = vpop.f32.mrb[80].mxu1 }
 0x8ca   : > { %v3100_v24 = vadd.f32 %v4019_v56, %v3000_v54  ;;  %v3091_v57 = vpop.f32.mrb[81].mxu1 }
 0x8cb   : > { %v3092_v58 = vadd.f32 %v3091_v57, %v3000_v54  ;;  %v4020_v59 = vpop.f32.mrb[82].mxu1 }
 0x8cc   : > { %v3103_v60 = vadd.f32 %v4020_v59, %v3000_v54  ;;  %v3094_v61 = vpop.f32.mrb[83].mxu1  ;;  %v3156_v1 = vmax.f32 %v3100_v24, 0.0 }
 0x8cd   : > { %v3095_v63 = vadd.f32 %v3094_v61, %v3000_v54  ;;  %v3154_v3 = vmax.f32 %v3092_v58, 0.0 }
 0x8ce   : > { %v3157_v2 = vmax.f32 %v3103_v60, 0.0 }
 0x8cf   : > { %v3155_v5 = vmax.f32 %v3095_v63, 0.0 }
 0x8d0   : > { %v3188_v6 = vpack.c.bf16 %v3157_v2, %v3156_v1 }
 0x8d1   : > { %v3187_v8 = vpack.c.bf16 %v3155_v5, %v3154_v3 }
 0x8d3   : > { %4049 = vmatprep.mubr.bf16.mxu0 %v3187_v8 }
 0x8d4   : > { %4050 = vmatmul.mubr.bf16.vlgmr.msra.gmra.mrb[144].mxu0 %v3188_v6 }
 0x8d9   : > { %v4023_v50 = vpop.f32.mrb[84].mxu1 }
 0x8da   : > { %v3116_v9 = vadd.f32 %v4023_v50, %v3000_v54  ;;  %v3107_v10 = vpop.f32.mrb[85].mxu1 }
 0x8db   : > { %v3108_v51 = vadd.f32 %v3107_v10, %v3000_v54  ;;  %v4024_v11 = vpop.f32.mrb[86].mxu1 }
 0x8dc   : > { %v3119_v12 = vadd.f32 %v4024_v11, %v3000_v54  ;;  %v3110_v16 = vpop.f32.mrb[87].mxu1  ;;  %v3160_v17 = vmax.f32 %v3116_v9, 0.0 }
 0x8dd   : > { %v3111_v13 = vadd.f32 %v3110_v16, %v3000_v54  ;;  %v3158_v20 = vmax.f32 %v3108_v51, 0.0 }
 0x8de   : > { %v3161_v14 = vmax.f32 %v3119_v12, 0.0 }
 0x8df   : > { %v3159_v22 = vmax.f32 %v3111_v13, 0.0 }
 0x8e0   : > { %v3190_v4 = vpack.c.bf16 %v3161_v14, %v3160_v17 }
 0x8e1   : > { %v3189_v7 = vpack.c.bf16 %v3159_v22, %v3158_v20 }
 0x8e3   : > { %4053 = vmatprep.mubr.bf16.mxu0 %v3189_v7 }
 0x8e4   : > { %4054 = vmatmul.mubr.bf16.gmra.mrb[148].mxu0 %v3190_v4 }
 0x8e9   : > { %v4027_v18 = vpop.f32.mrb[88].mxu1 }
 0x8ea   : > { %v3132_v19 = vadd.f32 %v4027_v18, %v3000_v54  ;;  %v3123_v52 = vpop.f32.mrb[89].mxu1 }
 0x8eb   : > { %v3124_v55 = vadd.f32 %v3123_v52, %v3000_v54  ;;  %v4028_v26 = vpop.f32.mrb[90].mxu1 }
 0x8ec   : > { %v3135_v28 = vadd.f32 %v4028_v26, %v3000_v54  ;;  %v3126_v41 = vpop.f32.mrb[91].mxu1  ;;  %v3164_v21 = vmax.f32 %v3132_v19, 0.0 }
 0x8ed   : > { %v3127_v43 = vadd.f32 %v3126_v41, %v3000_v54  ;;  %v3162_v62 = vmax.f32 %v3124_v55, 0.0 }
 0x8ee   : > { %v3165_v23 = vmax.f32 %v3135_v28, 0.0 }
 0x8ef   : > { %v3163_v0 = vmax.f32 %v3127_v43, 0.0 }
 0x8f0   : > { %v3192_v25 = vpack.c.bf16 %v3165_v23, %v3164_v21 }
 0x8f1   : > { %v3191_v45 = vpack.c.bf16 %v3163_v0, %v3162_v62 }
 0x8f3   : > { %4057 = vmatprep.mubr.bf16.mxu1 %v3191_v45 }
 0x8f4   : > { %4058 = vmatmul.mubr.bf16.vlgmr.msra.gmra.mrb[96].mxu1 %v3192_v25 }
 0x8f9   : > { %v4031_v15 = vpop.f32.mrb[92].mxu1 }
 0x8fa   : > { %v3148_v27 = vadd.f32 %v4031_v15, %v3000_v54  ;;  %v3139_v29 = vpop.f32.mrb[93].mxu1 }
 0x8fb   : > { %v3140_v46 = vadd.f32 %v3139_v29, %v3000_v54  ;;  %v4032_v30 = vpop.f32.mrb[94].mxu1 }
 0x8fc   : > { %v3151_v31 = vadd.f32 %v4032_v30, %v3000_v54  ;;  %v3142_v48 = vpop.f32.mrb[95].mxu1  ;;  %v3168_v33 = vmax.f32 %v3148_v27, 0.0 }
 0x8fd   : > { %v3143_v32 = vadd.f32 %v3142_v48, %v3000_v54  ;;  %v3166_v35 = vmax.f32 %v3140_v46, 0.0 }
 0x8fe   : > { %v3169_v34 = vmax.f32 %v3151_v31, 0.0 }
 0x8ff   : > { %v3167_v36 = vmax.f32 %v3143_v32, 0.0 }
 0x900   : > { %v3194_v37 = vpack.c.bf16 %v3169_v34, %v3168_v33 }
 0x901   : > { %v3193_v38 = vpack.c.bf16 %v3167_v36, %v3166_v35 }
 0x903   : > { %4061 = vmatprep.mubr.bf16.mxu1 %v3193_v38 }
 0x904   : > { %4062 = vmatmul.mubr.bf16.gmra.mrb[100].mxu1 %v3194_v37 }
 0x9a7   : > { %v4051_v40 = vpop.f32.mrb[144].mxu0 }
 0x9a8   : > { %v3286_v42 = vadd.f32 %v4051_v40, %v3186_v39  ;;  %v3277_v49 = vpop.f32.mrb[145].mxu0 }
 0x9a9   : > { %v3278_v44 = vadd.f32 %v3277_v49, %v3186_v39  ;;  %v4052_v47 = vpop.f32.mrb[146].mxu0 }
 0x9aa   : > { %3342 = vst [vmem:[%s5301_s24 + $0x10] sm:$0xff] %v3286_v42  ;;  %v3289_v53 = vadd.f32 %v4052_v47, %v3186_v39  ;;  %v3280_v54 = vpop.f32.mrb[147].mxu0 }
 0x9ab   : > { %3340 = vst [vmem:[%s5301_s24] sm:$0xff] %v3278_v44  ;;  %v3281_v56 = vadd.f32 %v3280_v54, %v3186_v39 }
 0x9ac   : > { %3343 = vst [vmem:[%s5301_s24 + $0x18] sm:$0xff] %v3289_v53 }
 0x9ad   : > { %3341 = vst [vmem:[%s5301_s24 + $0x8] sm:$0xff] %v3281_v56 }
 0x9b7   : > { %v4055_v24 = vpop.f32.mrb[148].mxu0 }
 0x9b8   : > { %v3302_v57 = vadd.f32 %v4055_v24, %v3186_v39  ;;  %v3293_v58 = vpop.f32.mrb[149].mxu0 }
 0x9b9   : > { %v3294_v59 = vadd.f32 %v3293_v58, %v3186_v39  ;;  %v4056_v60 = vpop.f32.mrb[150].mxu0 }
 0x9ba   : > { %3346 = vst [vmem:[%s5301_s24 + $0x30] sm:$0xff] %v3302_v57  ;;  %v3305_v61 = vadd.f32 %v4056_v60, %v3186_v39  ;;  %v3296_v63 = vpop.f32.mrb[151].mxu0 }
 0x9bb   : > { %3344 = vst [vmem:[%s5301_s24 + $0x20] sm:$0xff] %v3294_v59  ;;  %v3297_v1 = vadd.f32 %v3296_v63, %v3186_v39 }
 0x9bc   : > { %3347 = vst [vmem:[%s5301_s24 + $0x38] sm:$0xff] %v3305_v61 }
 0x9bd   : > { %3345 = vst [vmem:[%s5301_s24 + $0x28] sm:$0xff] %v3297_v1 }
 0x9c7   : > { %v4059_v2 = vpop.f32.mrb[96].mxu1 }
 0x9c8   : > { %v3318_v3 = vadd.f32 %v4059_v2, %v3186_v39  ;;  %v3309_v5 = vpop.f32.mrb[97].mxu1 }
 0x9c9   : > { %v3310_v6 = vadd.f32 %v3309_v5, %v3186_v39  ;;  %v4060_v8 = vpop.f32.mrb[98].mxu1 }
 0x9ca   : > { %3350 = vst [vmem:[%s5301_s24 + $0x50] sm:$0xff] %v3318_v3  ;;  %v3321_v50 = vadd.f32 %v4060_v8, %v3186_v39  ;;  %v3312_v9 = vpop.f32.mrb[99].mxu1 }
 0x9cb   : > { %3348 = vst [vmem:[%s5301_s24 + $0x40] sm:$0xff] %v3310_v6  ;;  %v3313_v10 = vadd.f32 %v3312_v9, %v3186_v39 }
 0x9cc   : > { %3351 = vst [vmem:[%s5301_s24 + $0x58] sm:$0xff] %v3321_v50 }
 0x9cd   : > { %3349 = vst [vmem:[%s5301_s24 + $0x48] sm:$0xff] %v3313_v10 }
 0x9d7   : > { %v4063_v51 = vpop.f32.mrb[100].mxu1 }
 0x9d8   : > { %v3334_v11 = vadd.f32 %v4063_v51, %v3186_v39  ;;  %v3325_v12 = vpop.f32.mrb[101].mxu1 }
 0x9d9   : > { %v3326_v16 = vadd.f32 %v3325_v12, %v3186_v39  ;;  %v4064_v13 = vpop.f32.mrb[102].mxu1 }
 0x9da   : > { %3354 = vst [vmem:[%s5301_s24 + $0x70] sm:$0xff] %v3334_v11  ;;  %v3337_v17 = vadd.f32 %v4064_v13, %v3186_v39  ;;  %v3328_v14 = vpop.f32.mrb[103].mxu1 }
 0x9db   : > { %3352 = vst [vmem:[%s5301_s24 + $0x60] sm:$0xff] %v3326_v16  ;;  %v3329_v20 = vadd.f32 %v3328_v14, %v3186_v39 }
 0x9dc   : > { %3355 = vst [vmem:[%s5301_s24 + $0x78] sm:$0xff] %v3337_v17 }
 0x9dd   : > { %3353 = vst [vmem:[%s5301_s24 + $0x68] sm:$0xff] %v3329_v20 }
 0x9de   : > { %4678 = shalt.err (!%p4675_p13)
}
 0x9df   : > { %s4679_s7 = scalar_lea.hbm %s5321_s12, 2048  ;;  %s4683_s11 = scalar_lea.hbm %s5375_s5, 4096 }
 0x9e0   : > { %p4680_p9 = scmp.ne.s32.totalorder %s5321_s12, %s4679_s7  ;;  %p4684_p4 = scmp.lt.u32.totalorder %s5321_s12, %s5375_s5 }
 0x9e1   : > { %p4685_p8 = scmp.lt.u32.totalorder %s4683_s11, %s4679_s7  ;;  %p4687_p10 = scmp.lt.u32.totalorder %s4679_s7, %s5321_s12 }
 0x9e2   : > { %p4681_p0 = pnand %p4680_p9, %p4950_p3 }
 0x9e3   : > { %p4686_p6 = por %p4685_p8, %p4684_p4 }
 0x9e4   : > { %p4682_p11 = pneg %p4681_p0 }
 0x9e5   : > { %p4688_p5 = por %p4687_p10, %p4686_p6 }
 0x9e7   : > { %p4689_p7 = pnand %p4688_p5, %p4682_p11 }
 0x9e9   : > { %4692 = shalt.err (!%p4689_p7)
}
 0x9ea   : > { %s4756_s26 = smov 128   ;;  %s4757_s14 = smov 8  }
 0x9eb   : > { %4163 = dma.vmem_to_hbm [thread:$0]  (%p4950_p3), %s5323_s28, 2048, %s5321_s12, %s3357_s22, %s4756_s26, %s4756_s26, %s4757_s14  }
 0x9ec PF: > { %s3385_s27 = sand.u32 1, %s4727_s18   ;;  %p5393_p12 = scmp.ne.s32.totalorder %s5380_s25, 0 }
 0x9ed   : > { %p5394_p2 = scmp.ge.s32.totalorder %s4739_s21, 2  ;;  %s3386_s16 = scalar_lea.sflag [#allocation4], %s3385_s27 }
 0x9ef   : > { %p4183_p1 = pnand %p5394_p2, %p5393_p12 }
 0x9f1   : > { %4722 = dma.done.wait (!%p4183_p1), %s3386_s16, 2048  }
 0x9f2   : > { %4724 = vsyncadd (!%p4183_p1), %s3386_s16, 4294965248  ;;  %p20_p13 = scmp.ge.s32.totalorder %s4937_s17, 4   ;;  %s5395_s18 = smov %s4731_s19 }
 0x9f3   : > { %s5396_s19 = smov %s4735_s20  ;;  %s5397_s20 = smov %s4946_s8 }
 0x9f4   : > { %s5398_s21 = smov %s4937_s17  ;;  %22 = sbr.rel (!%p20_p13) target bundleno = 7 (0x7), region = 104 }
 0x9fb   :  { %3391 = vsyncpa [#allocation3], 1 }
 0x9fc   :  { %3393 = vsyncpa [#allocation3 + $0x1], 1 }
 0x9fd   :  { %3394 = vsyncpa [#allocation6], 1 }
 0x9fe   :  { %3395 = vsyncpa [#allocation9], 1 }
 0x9ff   :  { %3396 = vsyncpa [#allocation4], 1 }
 0xa00   :  { %3398 = vsyncpa [#allocation4 + $0x1], 1 }

</bundles_post_ra>
